<compile_context>
chip_gen: v6e
topology: v6e:2x2x1
jax: 0.10.0
libtpu: 0.0.40
codegen_flags: <defaults>
</compile_context>

<pallas_src>
import numpy as np
import jax
import jax.numpy as jnp
from jax import lax
from jax.experimental import pallas as pl
from jax.experimental.pallas import tpu as pltpu

N = 2          # batch
CIN = 16
HIN = WIN = 4  # forced by Linear(512): 4x4 -> 3x3 -> 2x2, 128*2*2 = 512
C1 = C2 = 128
H1 = W1_ = 3   # after conv1 (k=2, stride 1, valid)
H2 = W2_ = 2   # after conv2
EPS = 1e-5
LANE = 128


def dqn_kernel(x_ref, w1_ref, w2_ref, wc_ref, cvec_ref, out_ref,
               xcol_ref, f1_ref, p2_ref, f2_ref, flat_ref):
    # Packed per-channel vectors:
    #   rows 0..5 = [conv1_b, bn1_g, bn1_b, conv2_b, bn2_g, bn2_b]
    #   row  6    = folded (L_s ∘ L_s2) bias in lanes 0..3
    cv = cvec_ref[...]
    b1, g1, be1 = cv[0:1, :], cv[1:2, :], cv[2:3, :]
    b2, g2, be2 = cv[3:4, :], cv[4:5, :], cv[5:6, :]
    bc = cv[6:7, 0:4]                                             # (1, 4)

    # ---- conv1: static im2col into (18, 512) scratch (lane block k=dy*2+dx),
    #      then a single K=512 MXU matmul.  x_ref rows are (n, h, w); lanes
    #      0..15 hold the 16 input channels (rest zero-padded by the wrapper,
    #      matched by zero rows in w1), so every copy is 128-lane aligned.
    for dy in range(2):
        for dx in range(2):
            k = dy * 2 + dx
            for n in range(N):
                for oi in range(H1):
                    src = n * (HIN * WIN) + (oi + dy) * WIN + dx
                    dst = n * (H1 * W1_) + oi * W1_
                    xcol_ref[pl.ds(dst, W1_), pl.ds(k * LANE, LANE)] = \
                        x_ref[pl.ds(src, W1_), :]
    a1 = jnp.dot(xcol_ref[...], w1_ref[...],
                 preferred_element_type=jnp.float32) + b1
    a1 = jnp.maximum(a1, 0.0)                                     # (18, 128)

    # ---- BatchNorm1 (training-mode batch stats), single-pass sums
    r1 = jnp.float32(1.0 / (N * H1 * W1_))
    m1 = jnp.sum(a1, axis=0, keepdims=True) * r1
    q1 = jnp.sum(a1 * a1, axis=0, keepdims=True) * r1
    sc1 = g1 * lax.rsqrt(q1 - m1 * m1 + EPS)
    f1_ref[...] = a1 * sc1 + (be1 - m1 * sc1)                     # (18, 128)

    # ---- conv2: static im2col into (8, 512) scratch, one K=512 matmul
    for dy in range(2):
        for dx in range(2):
            k = dy * 2 + dx
            for n in range(N):
                for oi in range(H2):
                    src = n * (H1 * W1_) + (oi + dy) * W1_ + dx
                    dst = n * (H2 * W2_) + oi * W2_
                    p2_ref[pl.ds(dst, W2_), pl.ds(k * LANE, LANE)] = \
                        f1_ref[pl.ds(src, W2_), :]
    a2 = jnp.dot(p2_ref[...], w2_ref[...],
                 preferred_element_type=jnp.float32) + b2
    a2 = jnp.maximum(a2, 0.0)                                     # (8, 128)

    # ---- BatchNorm2, single-pass sums
    r2 = jnp.float32(1.0 / (N * H2 * W2_))
    m2 = jnp.sum(a2, axis=0, keepdims=True) * r2
    q2 = jnp.sum(a2 * a2, axis=0, keepdims=True) * r2
    sc2 = g2 * lax.rsqrt(q2 - m2 * m2 + EPS)
    f2_ref[...] = a2 * sc2 + (be2 - m2 * sc2)                     # (8, 128)

    # ---- Flatten (PyTorch channel-major order folded into wc layout) +
    #      folded L_s∘L_s2: build (N, 512) slab, one K=512 matmul, softmax.
    for n in range(N):
        for p in range(H2 * W2_):
            flat_ref[pl.ds(n, 1), pl.ds(p * LANE, LANE)] = \
                f2_ref[pl.ds(n * (H2 * W2_) + p, 1), :]
    z = jnp.dot(flat_ref[...], wc_ref[...],
                preferred_element_type=jnp.float32) + bc          # (N, 4)

    # ---- Softmax(dim=1)
    z = z - jnp.max(z, axis=1, keepdims=True)
    e = jnp.exp(z)
    out_ref[...] = e / jnp.sum(e, axis=1, keepdims=True)


def prepare_params(params):
    """One-time (hoisted) weight layout prep — not on the per-call path."""
    # conv1 weight (O,I,kh,kw) -> (4, CIN, C1), zero-pad channels to 128 so it
    # lines up with the lane-padded im2col slab -> (512, 128).
    w1 = jnp.transpose(params['conv1_w'], (2, 3, 1, 0)).reshape(4, CIN, C1)
    w1 = jnp.pad(w1, ((0, 0), (0, LANE - CIN), (0, 0))).reshape(4 * LANE, C1)
    # conv2 weight -> (512, 128): row index = (dy*2+dx)*128 + cin
    w2 = jnp.transpose(params['conv2_w'], (2, 3, 1, 0)).reshape(4 * C1, C2)
    # Fold L_s and L_s2 (no nonlinearity between them) into one (512, 4)
    # weight + (4,) bias.  Exact by associativity; computed once here at
    # HIGHEST precision so it adds no per-call cost or numeric drift.
    hi = jax.lax.Precision.HIGHEST
    wc = jnp.dot(params['ls_w'].T, params['ls2_w'].T, precision=hi)  # (512, 4)
    # PyTorch flatten index = c*4 + p  ->  kernel row index p*128 + c
    wc = jnp.transpose(wc.reshape(C2, H2 * W2_, 4), (1, 0, 2)).reshape(4 * C2, 4)
    bc = jnp.dot(params['ls2_w'], params['ls_b'], precision=hi) + params['ls2_b']
    # Packed small vectors (cuts DMA count): one (7, 128) slab.
    cvec = jnp.concatenate(
        [jnp.stack([params['conv1_b'], params['bn1_g'], params['bn1_b'],
                    params['conv2_b'], params['bn2_g'], params['bn2_b']],
                   axis=0),
         jnp.pad(bc.reshape(1, 4), ((0, 0), (0, LANE - 4)))], axis=0)
    return dict(w1=w1, w2=w2, wc=wc, cvec=cvec)


def dqn_forward(x, prep):
    """x: (N, 16, 4, 4) float32, NCHW (PyTorch convention)."""
    # Only per-call glue: channels-last slab, zero-padded to 128 lanes so all
    # in-kernel copies are 128-lane aligned.  (Fused under jit.)
    xs = jnp.transpose(x, (0, 2, 3, 1)).reshape(N * HIN * WIN, CIN)
    xs = jnp.pad(xs, ((0, 0), (0, LANE - CIN)))                   # (32, 128)

    vspec = pl.BlockSpec(memory_space=pltpu.MemorySpace.VMEM)
    ins = (xs, prep['w1'], prep['w2'], prep['wc'], prep['cvec'])
    # Note: for batched serving, add a batch grid axis with
    # dimension_semantics=("parallel",); at N=2 a grid only adds overhead.
    return pl.pallas_call(
        dqn_kernel,
        out_shape=jax.ShapeDtypeStruct((N, 4), jnp.float32),
        in_specs=[vspec] * len(ins),
        out_specs=vspec,
        scratch_shapes=[
            pltpu.VMEM((N * H1 * W1_, 4 * LANE), jnp.float32),    # conv1 im2col
            pltpu.VMEM((N * H1 * W1_, C1), jnp.float32),          # f1
            pltpu.VMEM((N * H2 * W2_, 4 * LANE), jnp.float32),    # conv2 im2col
            pltpu.VMEM((N * H2 * W2_, C2), jnp.float32),          # f2
            pltpu.VMEM((N, 4 * LANE), jnp.float32),               # flatten slab
        ],
    )(*ins)


def dqn_reference(x, params):
    """Pure-JAX reference mirroring the PyTorch forward (training-mode BN).

    Deliberately keeps L_s and L_s2 as two separate matmuls so the parameter
    folding in prepare_params() is validated against the unfolded math.
    """
    def bn(a, g, b):
        m = a.mean(axis=(0, 2, 3), keepdims=True)
        v = ((a - m) ** 2).mean(axis=(0, 2, 3), keepdims=True)
        return (a - m) / jnp.sqrt(v + EPS) * g[None, :, None, None] \
            + b[None, :, None, None]

    dn = ('NCHW', 'OIHW', 'NCHW')
    c1 = lax.conv_general_dilated(x, params['conv1_w'], (1, 1), 'VALID',
                                  dimension_numbers=dn) \
        + params['conv1_b'][None, :, None, None]
    f1 = bn(jnp.maximum(c1, 0.0), params['bn1_g'], params['bn1_b'])
    c2 = lax.conv_general_dilated(f1, params['conv2_w'], (1, 1), 'VALID',
                                  dimension_numbers=dn) \
        + params['conv2_b'][None, :, None, None]
    f2 = bn(jnp.maximum(c2, 0.0), params['bn2_g'], params['bn2_b'])
    flat = f2.reshape(N, -1)                                      # PyTorch Flatten
    y = flat @ params['ls_w'].T + params['ls_b']
    z = y @ params['ls2_w'].T + params['ls2_b']
    return jax.nn.softmax(z, axis=1)


if __name__ == "__main__":
    key = jax.random.PRNGKey(0)
    ks = jax.random.split(key, 9)
    params = {
        'conv1_w': jax.random.normal(ks[1], (C1, CIN, 2, 2), jnp.float32) * 0.1,
        'conv1_b': jax.random.normal(ks[2], (C1,), jnp.float32) * 0.1,
        'conv2_w': jax.random.normal(ks[3], (C2, C1, 2, 2), jnp.float32) * 0.05,
        'conv2_b': jax.random.normal(ks[4], (C2,), jnp.float32) * 0.1,
        'bn1_g': jnp.ones((C1,), jnp.float32),   # PyTorch BatchNorm2d defaults
        'bn1_b': jnp.zeros((C1,), jnp.float32),
        'bn2_g': jnp.ones((C2,), jnp.float32),
        'bn2_b': jnp.zeros((C2,), jnp.float32),
        'ls_w': jax.random.normal(ks[5], (256, 512), jnp.float32) * 0.05,
        'ls_b': jax.random.normal(ks[6], (256,), jnp.float32) * 0.1,
        'ls2_w': jax.random.normal(ks[7], (4, 256), jnp.float32) * 0.05,
        'ls2_b': jax.random.normal(ks[8], (4,), jnp.float32) * 0.1,
    }
    x = jax.random.normal(ks[0], (N, CIN, HIN, WIN), jnp.float32)

    prep = jax.tree_util.tree_map(jax.block_until_ready, prepare_params(params))
    fwd = jax.jit(dqn_forward)

    out = jax.block_until_ready(fwd(x, prep))
    ref = jax.block_until_ready(dqn_reference(x, params))
    assert out.shape == (N, 4)
    np.testing.assert_allclose(np.asarray(out), np.asarray(ref),
                               rtol=1e-4, atol=1e-5)
    print("KERNEL_OK")
</pallas_src>

<mosaic_0001>
module attributes {stable_mosaic.version = 11 : i64} {
  func.func @dqn_kernel(%arg0: memref<32x128xf32, #tpu.memory_space<vmem>>, %arg1: memref<512x128xf32, #tpu.memory_space<vmem>>, %arg2: memref<512x128xf32, #tpu.memory_space<vmem>>, %arg3: memref<512x4xf32, #tpu.memory_space<vmem>>, %arg4: memref<7x128xf32, #tpu.memory_space<vmem>>, %arg5: memref<2x4xf32, #tpu.memory_space<vmem>>, %arg6: memref<18x512xf32, #tpu.memory_space<vmem>>, %arg7: memref<18x128xf32, #tpu.memory_space<vmem>>, %arg8: memref<8x512xf32, #tpu.memory_space<vmem>>, %arg9: memref<8x128xf32, #tpu.memory_space<vmem>>, %arg10: memref<2x512xf32, #tpu.memory_space<vmem>>) attributes {dimension_semantics = [], scalar_prefetch = 0 : i64, scratch_operands = 5 : i64, tpu.core_type = #tpu.core_type<tc>} {
    %c0 = arith.constant 0 : index
    %c0_0 = arith.constant 0 : index
    %0 = vector.load %arg4[%c0, %c0_0] : memref<7x128xf32, #tpu.memory_space<vmem>>, vector<7x128xf32>
    %1 = vector.extract_strided_slice %0 {offsets = [0, 0], sizes = [1, 128], strides = [1, 1]} : vector<7x128xf32> to vector<1x128xf32>
    %2 = vector.extract_strided_slice %0 {offsets = [1, 0], sizes = [1, 128], strides = [1, 1]} : vector<7x128xf32> to vector<1x128xf32>
    %3 = vector.extract_strided_slice %0 {offsets = [2, 0], sizes = [1, 128], strides = [1, 1]} : vector<7x128xf32> to vector<1x128xf32>
    %4 = vector.extract_strided_slice %0 {offsets = [3, 0], sizes = [1, 128], strides = [1, 1]} : vector<7x128xf32> to vector<1x128xf32>
    %5 = vector.extract_strided_slice %0 {offsets = [4, 0], sizes = [1, 128], strides = [1, 1]} : vector<7x128xf32> to vector<1x128xf32>
    %6 = vector.extract_strided_slice %0 {offsets = [5, 0], sizes = [1, 128], strides = [1, 1]} : vector<7x128xf32> to vector<1x128xf32>
    %7 = vector.extract_strided_slice %0 {offsets = [6, 0], sizes = [1, 4], strides = [1, 1]} : vector<7x128xf32> to vector<1x4xf32>
    %c0_1 = arith.constant 0 : index
    %c0_2 = arith.constant 0 : index
    %8 = vector.load %arg0[%c0_1, %c0_2] : memref<32x128xf32, #tpu.memory_space<vmem>>, vector<3x128xf32>
    %c0_3 = arith.constant 0 : index
    %c0_4 = arith.constant 0 : index
    %9 = vector.load %arg6[%c0_3, %c0_4] : memref<18x512xf32, #tpu.memory_space<vmem>>, vector<3x128xf32>
    tpu.vector_store %arg6[%c0_3, %c0_4], %8 {strides = array<i32>} : memref<18x512xf32, #tpu.memory_space<vmem>>, vector<3x128xf32>,
    %c4 = arith.constant 4 : index
    %c0_5 = arith.constant 0 : index
    %10 = vector.load %arg0[%c4, %c0_5] : memref<32x128xf32, #tpu.memory_space<vmem>>, vector<3x128xf32>
    %c3 = arith.constant 3 : index
    %c0_6 = arith.constant 0 : index
    %11 = vector.load %arg6[%c3, %c0_6] : memref<18x512xf32, #tpu.memory_space<vmem>>, vector<3x128xf32>
    tpu.vector_store %arg6[%c3, %c0_6], %10 {strides = array<i32>} : memref<18x512xf32, #tpu.memory_space<vmem>>, vector<3x128xf32>,
    %c8 = arith.constant 8 : index
    %c0_7 = arith.constant 0 : index
    %12 = vector.load %arg0[%c8, %c0_7] : memref<32x128xf32, #tpu.memory_space<vmem>>, vector<3x128xf32>
    %c6 = arith.constant 6 : index
    %c0_8 = arith.constant 0 : index
    %13 = vector.load %arg6[%c6, %c0_8] : memref<18x512xf32, #tpu.memory_space<vmem>>, vector<3x128xf32>
    tpu.vector_store %arg6[%c6, %c0_8], %12 {strides = array<i32>} : memref<18x512xf32, #tpu.memory_space<vmem>>, vector<3x128xf32>,
    %c16 = arith.constant 16 : index
    %c0_9 = arith.constant 0 : index
    %14 = vector.load %arg0[%c16, %c0_9] : memref<32x128xf32, #tpu.memory_space<vmem>>, vector<3x128xf32>
    %c9 = arith.constant 9 : index
    %c0_10 = arith.constant 0 : index
    %15 = vector.load %arg6[%c9, %c0_10] : memref<18x512xf32, #tpu.memory_space<vmem>>, vector<3x128xf32>
    tpu.vector_store %arg6[%c9, %c0_10], %14 {strides = array<i32>} : memref<18x512xf32, #tpu.memory_space<vmem>>, vector<3x128xf32>,
    %c20 = arith.constant 20 : index
    %c0_11 = arith.constant 0 : index
    %16 = vector.load %arg0[%c20, %c0_11] : memref<32x128xf32, #tpu.memory_space<vmem>>, vector<3x128xf32>
    %c12 = arith.constant 12 : index
    %c0_12 = arith.constant 0 : index
    %17 = vector.load %arg6[%c12, %c0_12] : memref<18x512xf32, #tpu.memory_space<vmem>>, vector<3x128xf32>
    tpu.vector_store %arg6[%c12, %c0_12], %16 {strides = array<i32>} : memref<18x512xf32, #tpu.memory_space<vmem>>, vector<3x128xf32>,
    %c24 = arith.constant 24 : index
    %c0_13 = arith.constant 0 : index
    %18 = vector.load %arg0[%c24, %c0_13] : memref<32x128xf32, #tpu.memory_space<vmem>>, vector<3x128xf32>
    %c15 = arith.constant 15 : index
    %c0_14 = arith.constant 0 : index
    %19 = vector.load %arg6[%c15, %c0_14] : memref<18x512xf32, #tpu.memory_space<vmem>>, vector<3x128xf32>
    tpu.vector_store %arg6[%c15, %c0_14], %18 {strides = array<i32>} : memref<18x512xf32, #tpu.memory_space<vmem>>, vector<3x128xf32>,
    %c1 = arith.constant 1 : index
    %c0_15 = arith.constant 0 : index
    %20 = vector.load %arg0[%c1, %c0_15] : memref<32x128xf32, #tpu.memory_space<vmem>>, vector<3x128xf32>
    %c0_16 = arith.constant 0 : index
    %c128 = arith.constant 128 : index
    %21 = vector.load %arg6[%c0_16, %c128] : memref<18x512xf32, #tpu.memory_space<vmem>>, vector<3x128xf32>
    tpu.vector_store %arg6[%c0_16, %c128], %20 {strides = array<i32>} : memref<18x512xf32, #tpu.memory_space<vmem>>, vector<3x128xf32>,
    %c5 = arith.constant 5 : index
    %c0_17 = arith.constant 0 : index
    %22 = vector.load %arg0[%c5, %c0_17] : memref<32x128xf32, #tpu.memory_space<vmem>>, vector<3x128xf32>
    %c3_18 = arith.constant 3 : index
    %c128_19 = arith.constant 128 : index
    %23 = vector.load %arg6[%c3_18, %c128_19] : memref<18x512xf32, #tpu.memory_space<vmem>>, vector<3x128xf32>
    tpu.vector_store %arg6[%c3_18, %c128_19], %22 {strides = array<i32>} : memref<18x512xf32, #tpu.memory_space<vmem>>, vector<3x128xf32>,
    %c9_20 = arith.constant 9 : index
    %c0_21 = arith.constant 0 : index
    %24 = vector.load %arg0[%c9_20, %c0_21] : memref<32x128xf32, #tpu.memory_space<vmem>>, vector<3x128xf32>
    %c6_22 = arith.constant 6 : index
    %c128_23 = arith.constant 128 : index
    %25 = vector.load %arg6[%c6_22, %c128_23] : memref<18x512xf32, #tpu.memory_space<vmem>>, vector<3x128xf32>
    tpu.vector_store %arg6[%c6_22, %c128_23], %24 {strides = array<i32>} : memref<18x512xf32, #tpu.memory_space<vmem>>, vector<3x128xf32>,
    %c17 = arith.constant 17 : index
    %c0_24 = arith.constant 0 : index
    %26 = vector.load %arg0[%c17, %c0_24] : memref<32x128xf32, #tpu.memory_space<vmem>>, vector<3x128xf32>
    %c9_25 = arith.constant 9 : index
    %c128_26 = arith.constant 128 : index
    %27 = vector.load %arg6[%c9_25, %c128_26] : memref<18x512xf32, #tpu.memory_space<vmem>>, vector<3x128xf32>
    tpu.vector_store %arg6[%c9_25, %c128_26], %26 {strides = array<i32>} : memref<18x512xf32, #tpu.memory_space<vmem>>, vector<3x128xf32>,
    %c21 = arith.constant 21 : index
    %c0_27 = arith.constant 0 : index
    %28 = vector.load %arg0[%c21, %c0_27] : memref<32x128xf32, #tpu.memory_space<vmem>>, vector<3x128xf32>
    %c12_28 = arith.constant 12 : index
    %c128_29 = arith.constant 128 : index
    %29 = vector.load %arg6[%c12_28, %c128_29] : memref<18x512xf32, #tpu.memory_space<vmem>>, vector<3x128xf32>
    tpu.vector_store %arg6[%c12_28, %c128_29], %28 {strides = array<i32>} : memref<18x512xf32, #tpu.memory_space<vmem>>, vector<3x128xf32>,
    %c25 = arith.constant 25 : index
    %c0_30 = arith.constant 0 : index
    %30 = vector.load %arg0[%c25, %c0_30] : memref<32x128xf32, #tpu.memory_space<vmem>>, vector<3x128xf32>
    %c15_31 = arith.constant 15 : index
    %c128_32 = arith.constant 128 : index
    %31 = vector.load %arg6[%c15_31, %c128_32] : memref<18x512xf32, #tpu.memory_space<vmem>>, vector<3x128xf32>
    tpu.vector_store %arg6[%c15_31, %c128_32], %30 {strides = array<i32>} : memref<18x512xf32, #tpu.memory_space<vmem>>, vector<3x128xf32>,
    %c4_33 = arith.constant 4 : index
    %c0_34 = arith.constant 0 : index
    %32 = vector.load %arg0[%c4_33, %c0_34] : memref<32x128xf32, #tpu.memory_space<vmem>>, vector<3x128xf32>
    %c0_35 = arith.constant 0 : index
    %c256 = arith.constant 256 : index
    %33 = vector.load %arg6[%c0_35, %c256] : memref<18x512xf32, #tpu.memory_space<vmem>>, vector<3x128xf32>
    tpu.vector_store %arg6[%c0_35, %c256], %32 {strides = array<i32>} : memref<18x512xf32, #tpu.memory_space<vmem>>, vector<3x128xf32>,
    %c8_36 = arith.constant 8 : index
    %c0_37 = arith.constant 0 : index
    %34 = vector.load %arg0[%c8_36, %c0_37] : memref<32x128xf32, #tpu.memory_space<vmem>>, vector<3x128xf32>
    %c3_38 = arith.constant 3 : index
    %c256_39 = arith.constant 256 : index
    %35 = vector.load %arg6[%c3_38, %c256_39] : memref<18x512xf32, #tpu.memory_space<vmem>>, vector<3x128xf32>
    tpu.vector_store %arg6[%c3_38, %c256_39], %34 {strides = array<i32>} : memref<18x512xf32, #tpu.memory_space<vmem>>, vector<3x128xf32>,
    %c12_40 = arith.constant 12 : index
    %c0_41 = arith.constant 0 : index
    %36 = vector.load %arg0[%c12_40, %c0_41] : memref<32x128xf32, #tpu.memory_space<vmem>>, vector<3x128xf32>
    %c6_42 = arith.constant 6 : index
    %c256_43 = arith.constant 256 : index
    %37 = vector.load %arg6[%c6_42, %c256_43] : memref<18x512xf32, #tpu.memory_space<vmem>>, vector<3x128xf32>
    tpu.vector_store %arg6[%c6_42, %c256_43], %36 {strides = array<i32>} : memref<18x512xf32, #tpu.memory_space<vmem>>, vector<3x128xf32>,
    %c20_44 = arith.constant 20 : index
    %c0_45 = arith.constant 0 : index
    %38 = vector.load %arg0[%c20_44, %c0_45] : memref<32x128xf32, #tpu.memory_space<vmem>>, vector<3x128xf32>
    %c9_46 = arith.constant 9 : index
    %c256_47 = arith.constant 256 : index
    %39 = vector.load %arg6[%c9_46, %c256_47] : memref<18x512xf32, #tpu.memory_space<vmem>>, vector<3x128xf32>
    tpu.vector_store %arg6[%c9_46, %c256_47], %38 {strides = array<i32>} : memref<18x512xf32, #tpu.memory_space<vmem>>, vector<3x128xf32>,
    %c24_48 = arith.constant 24 : index
    %c0_49 = arith.constant 0 : index
    %40 = vector.load %arg0[%c24_48, %c0_49] : memref<32x128xf32, #tpu.memory_space<vmem>>, vector<3x128xf32>
    %c12_50 = arith.constant 12 : index
    %c256_51 = arith.constant 256 : index
    %41 = vector.load %arg6[%c12_50, %c256_51] : memref<18x512xf32, #tpu.memory_space<vmem>>, vector<3x128xf32>
    tpu.vector_store %arg6[%c12_50, %c256_51], %40 {strides = array<i32>} : memref<18x512xf32, #tpu.memory_space<vmem>>, vector<3x128xf32>,
    %c28 = arith.constant 28 : index
    %c0_52 = arith.constant 0 : index
    %42 = vector.load %arg0[%c28, %c0_52] : memref<32x128xf32, #tpu.memory_space<vmem>>, vector<3x128xf32>
    %c15_53 = arith.constant 15 : index
    %c256_54 = arith.constant 256 : index
    %43 = vector.load %arg6[%c15_53, %c256_54] : memref<18x512xf32, #tpu.memory_space<vmem>>, vector<3x128xf32>
    tpu.vector_store %arg6[%c15_53, %c256_54], %42 {strides = array<i32>} : memref<18x512xf32, #tpu.memory_space<vmem>>, vector<3x128xf32>,
    %c5_55 = arith.constant 5 : index
    %c0_56 = arith.constant 0 : index
    %44 = vector.load %arg0[%c5_55, %c0_56] : memref<32x128xf32, #tpu.memory_space<vmem>>, vector<3x128xf32>
    %c0_57 = arith.constant 0 : index
    %c384 = arith.constant 384 : index
    %45 = vector.load %arg6[%c0_57, %c384] : memref<18x512xf32, #tpu.memory_space<vmem>>, vector<3x128xf32>
    tpu.vector_store %arg6[%c0_57, %c384], %44 {strides = array<i32>} : memref<18x512xf32, #tpu.memory_space<vmem>>, vector<3x128xf32>,
    %c9_58 = arith.constant 9 : index
    %c0_59 = arith.constant 0 : index
    %46 = vector.load %arg0[%c9_58, %c0_59] : memref<32x128xf32, #tpu.memory_space<vmem>>, vector<3x128xf32>
    %c3_60 = arith.constant 3 : index
    %c384_61 = arith.constant 384 : index
    %47 = vector.load %arg6[%c3_60, %c384_61] : memref<18x512xf32, #tpu.memory_space<vmem>>, vector<3x128xf32>
    tpu.vector_store %arg6[%c3_60, %c384_61], %46 {strides = array<i32>} : memref<18x512xf32, #tpu.memory_space<vmem>>, vector<3x128xf32>,
    %c13 = arith.constant 13 : index
    %c0_62 = arith.constant 0 : index
    %48 = vector.load %arg0[%c13, %c0_62] : memref<32x128xf32, #tpu.memory_space<vmem>>, vector<3x128xf32>
    %c6_63 = arith.constant 6 : index
    %c384_64 = arith.constant 384 : index
    %49 = vector.load %arg6[%c6_63, %c384_64] : memref<18x512xf32, #tpu.memory_space<vmem>>, vector<3x128xf32>
    tpu.vector_store %arg6[%c6_63, %c384_64], %48 {strides = array<i32>} : memref<18x512xf32, #tpu.memory_space<vmem>>, vector<3x128xf32>,
    %c21_65 = arith.constant 21 : index
    %c0_66 = arith.constant 0 : index
    %50 = vector.load %arg0[%c21_65, %c0_66] : memref<32x128xf32, #tpu.memory_space<vmem>>, vector<3x128xf32>
    %c9_67 = arith.constant 9 : index
    %c384_68 = arith.constant 384 : index
    %51 = vector.load %arg6[%c9_67, %c384_68] : memref<18x512xf32, #tpu.memory_space<vmem>>, vector<3x128xf32>
    tpu.vector_store %arg6[%c9_67, %c384_68], %50 {strides = array<i32>} : memref<18x512xf32, #tpu.memory_space<vmem>>, vector<3x128xf32>,
    %c25_69 = arith.constant 25 : index
    %c0_70 = arith.constant 0 : index
    %52 = vector.load %arg0[%c25_69, %c0_70] : memref<32x128xf32, #tpu.memory_space<vmem>>, vector<3x128xf32>
    %c12_71 = arith.constant 12 : index
    %c384_72 = arith.constant 384 : index
    %53 = vector.load %arg6[%c12_71, %c384_72] : memref<18x512xf32, #tpu.memory_space<vmem>>, vector<3x128xf32>
    tpu.vector_store %arg6[%c12_71, %c384_72], %52 {strides = array<i32>} : memref<18x512xf32, #tpu.memory_space<vmem>>, vector<3x128xf32>,
    %c29 = arith.constant 29 : index
    %c0_73 = arith.constant 0 : index
    %54 = vector.load %arg0[%c29, %c0_73] : memref<32x128xf32, #tpu.memory_space<vmem>>, vector<3x128xf32>
    %c15_74 = arith.constant 15 : index
    %c384_75 = arith.constant 384 : index
    %55 = vector.load %arg6[%c15_74, %c384_75] : memref<18x512xf32, #tpu.memory_space<vmem>>, vector<3x128xf32>
    tpu.vector_store %arg6[%c15_74, %c384_75], %54 {strides = array<i32>} : memref<18x512xf32, #tpu.memory_space<vmem>>, vector<3x128xf32>,
    %c0_76 = arith.constant 0 : index
    %c0_77 = arith.constant 0 : index
    %56 = vector.load %arg6[%c0_76, %c0_77] : memref<18x512xf32, #tpu.memory_space<vmem>>, vector<18x512xf32>
    %c0_78 = arith.constant 0 : index
    %c0_79 = arith.constant 0 : index
    %57 = vector.load %arg1[%c0_78, %c0_79] : memref<512x128xf32, #tpu.memory_space<vmem>>, vector<512x128xf32>
    %cst = arith.constant dense<0.000000e+00> : vector<18x128xf32>
    %58 = tpu.matmul %56, %57, %cst {dimension_numbers = #tpu.dot_dimension_numbers<[1], [0], [0], [1], [0, 0, 1, 1], [], []>} : vector<18x512xf32>, vector<512x128xf32>, vector<18x128xf32> -> vector<18x128xf32>
    %59 = vector.broadcast %1 : vector<1x128xf32> to vector<18x128xf32>
    %60 = arith.addf %58, %59 : vector<18x128xf32>
    %cst_80 = arith.constant 0.000000e+00 : f32
    %61 = vector.broadcast %cst_80 : f32 to vector<18x128xf32>
    %62 = arith.maximumf %60, %61 : vector<18x128xf32>
    %cst_81 = arith.constant dense<0.000000e+00> : vector<128xf32>
    %63 = vector.multi_reduction <add>, %62, %cst_81 [0] : vector<18x128xf32> to vector<128xf32>
    %64 = vector.shape_cast %63 : vector<128xf32> to vector<1x128xf32>
    %cst_82 = arith.constant 0.055555556 : f32
    %65 = vector.broadcast %cst_82 : f32 to vector<1x128xf32>
    %66 = arith.mulf %64, %65 : vector<1x128xf32>
    %67 = arith.mulf %62, %62 : vector<18x128xf32>
    %cst_83 = arith.constant dense<0.000000e+00> : vector<128xf32>
    %68 = vector.multi_reduction <add>, %67, %cst_83 [0] : vector<18x128xf32> to vector<128xf32>
    %69 = vector.shape_cast %68 : vector<128xf32> to vector<1x128xf32>
    %cst_84 = arith.constant 0.055555556 : f32
    %70 = vector.broadcast %cst_84 : f32 to vector<1x128xf32>
    %71 = arith.mulf %69, %70 : vector<1x128xf32>
    %72 = arith.mulf %66, %66 : vector<1x128xf32>
    %73 = arith.subf %71, %72 : vector<1x128xf32>
    %cst_85 = arith.constant 9.99999974E-6 : f32
    %74 = vector.broadcast %cst_85 : f32 to vector<1x128xf32>
    %75 = arith.addf %73, %74 : vector<1x128xf32>
    %76 = math.rsqrt %75 : vector<1x128xf32>
    %77 = arith.mulf %2, %76 : vector<1x128xf32>
    %78 = vector.broadcast %77 : vector<1x128xf32> to vector<18x128xf32>
    %79 = arith.mulf %62, %78 : vector<18x128xf32>
    %80 = arith.mulf %66, %77 : vector<1x128xf32>
    %81 = arith.subf %3, %80 : vector<1x128xf32>
    %82 = vector.broadcast %81 : vector<1x128xf32> to vector<18x128xf32>
    %83 = arith.addf %79, %82 : vector<18x128xf32>
    %c0_86 = arith.constant 0 : index
    %c0_87 = arith.constant 0 : index
    %84 = vector.load %arg7[%c0_86, %c0_87] : memref<18x128xf32, #tpu.memory_space<vmem>>, vector<18x128xf32>
    tpu.vector_store %arg7[%c0_86, %c0_87], %83 {strides = array<i32>} : memref<18x128xf32, #tpu.memory_space<vmem>>, vector<18x128xf32>,
    %c0_88 = arith.constant 0 : index
    %c0_89 = arith.constant 0 : index
    %85 = vector.load %arg7[%c0_88, %c0_89] : memref<18x128xf32, #tpu.memory_space<vmem>>, vector<2x128xf32>
    %c0_90 = arith.constant 0 : index
    %c0_91 = arith.constant 0 : index
    %86 = vector.load %arg8[%c0_90, %c0_91] : memref<8x512xf32, #tpu.memory_space<vmem>>, vector<2x128xf32>
    tpu.vector_store %arg8[%c0_90, %c0_91], %85 {strides = array<i32>} : memref<8x512xf32, #tpu.memory_space<vmem>>, vector<2x128xf32>,
    %c3_92 = arith.constant 3 : index
    %c0_93 = arith.constant 0 : index
    %87 = vector.load %arg7[%c3_92, %c0_93] : memref<18x128xf32, #tpu.memory_space<vmem>>, vector<2x128xf32>
    %c2 = arith.constant 2 : index
    %c0_94 = arith.constant 0 : index
    %88 = vector.load %arg8[%c2, %c0_94] : memref<8x512xf32, #tpu.memory_space<vmem>>, vector<2x128xf32>
    tpu.vector_store %arg8[%c2, %c0_94], %87 {strides = array<i32>} : memref<8x512xf32, #tpu.memory_space<vmem>>, vector<2x128xf32>,
    %c9_95 = arith.constant 9 : index
    %c0_96 = arith.constant 0 : index
    %89 = vector.load %arg7[%c9_95, %c0_96] : memref<18x128xf32, #tpu.memory_space<vmem>>, vector<2x128xf32>
    %c4_97 = arith.constant 4 : index
    %c0_98 = arith.constant 0 : index
    %90 = vector.load %arg8[%c4_97, %c0_98] : memref<8x512xf32, #tpu.memory_space<vmem>>, vector<2x128xf32>
    tpu.vector_store %arg8[%c4_97, %c0_98], %89 {strides = array<i32>} : memref<8x512xf32, #tpu.memory_space<vmem>>, vector<2x128xf32>,
    %c12_99 = arith.constant 12 : index
    %c0_100 = arith.constant 0 : index
    %91 = vector.load %arg7[%c12_99, %c0_100] : memref<18x128xf32, #tpu.memory_space<vmem>>, vector<2x128xf32>
    %c6_101 = arith.constant 6 : index
    %c0_102 = arith.constant 0 : index
    %92 = vector.load %arg8[%c6_101, %c0_102] : memref<8x512xf32, #tpu.memory_space<vmem>>, vector<2x128xf32>
    tpu.vector_store %arg8[%c6_101, %c0_102], %91 {strides = array<i32>} : memref<8x512xf32, #tpu.memory_space<vmem>>, vector<2x128xf32>,
    %c1_103 = arith.constant 1 : index
    %c0_104 = arith.constant 0 : index
    %93 = vector.load %arg7[%c1_103, %c0_104] : memref<18x128xf32, #tpu.memory_space<vmem>>, vector<2x128xf32>
    %c0_105 = arith.constant 0 : index
    %c128_106 = arith.constant 128 : index
    %94 = vector.load %arg8[%c0_105, %c128_106] : memref<8x512xf32, #tpu.memory_space<vmem>>, vector<2x128xf32>
    tpu.vector_store %arg8[%c0_105, %c128_106], %93 {strides = array<i32>} : memref<8x512xf32, #tpu.memory_space<vmem>>, vector<2x128xf32>,
    %c4_107 = arith.constant 4 : index
    %c0_108 = arith.constant 0 : index
    %95 = vector.load %arg7[%c4_107, %c0_108] : memref<18x128xf32, #tpu.memory_space<vmem>>, vector<2x128xf32>
    %c2_109 = arith.constant 2 : index
    %c128_110 = arith.constant 128 : index
    %96 = vector.load %arg8[%c2_109, %c128_110] : memref<8x512xf32, #tpu.memory_space<vmem>>, vector<2x128xf32>
    tpu.vector_store %arg8[%c2_109, %c128_110], %95 {strides = array<i32>} : memref<8x512xf32, #tpu.memory_space<vmem>>, vector<2x128xf32>,
    %c10 = arith.constant 10 : index
    %c0_111 = arith.constant 0 : index
    %97 = vector.load %arg7[%c10, %c0_111] : memref<18x128xf32, #tpu.memory_space<vmem>>, vector<2x128xf32>
    %c4_112 = arith.constant 4 : index
    %c128_113 = arith.constant 128 : index
    %98 = vector.load %arg8[%c4_112, %c128_113] : memref<8x512xf32, #tpu.memory_space<vmem>>, vector<2x128xf32>
    tpu.vector_store %arg8[%c4_112, %c128_113], %97 {strides = array<i32>} : memref<8x512xf32, #tpu.memory_space<vmem>>, vector<2x128xf32>,
    %c13_114 = arith.constant 13 : index
    %c0_115 = arith.constant 0 : index
    %99 = vector.load %arg7[%c13_114, %c0_115] : memref<18x128xf32, #tpu.memory_space<vmem>>, vector<2x128xf32>
    %c6_116 = arith.constant 6 : index
    %c128_117 = arith.constant 128 : index
    %100 = vector.load %arg8[%c6_116, %c128_117] : memref<8x512xf32, #tpu.memory_space<vmem>>, vector<2x128xf32>
    tpu.vector_store %arg8[%c6_116, %c128_117], %99 {strides = array<i32>} : memref<8x512xf32, #tpu.memory_space<vmem>>, vector<2x128xf32>,
    %c3_118 = arith.constant 3 : index
    %c0_119 = arith.constant 0 : index
    %101 = vector.load %arg7[%c3_118, %c0_119] : memref<18x128xf32, #tpu.memory_space<vmem>>, vector<2x128xf32>
    %c0_120 = arith.constant 0 : index
    %c256_121 = arith.constant 256 : index
    %102 = vector.load %arg8[%c0_120, %c256_121] : memref<8x512xf32, #tpu.memory_space<vmem>>, vector<2x128xf32>
    tpu.vector_store %arg8[%c0_120, %c256_121], %101 {strides = array<i32>} : memref<8x512xf32, #tpu.memory_space<vmem>>, vector<2x128xf32>,
    %c6_122 = arith.constant 6 : index
    %c0_123 = arith.constant 0 : index
    %103 = vector.load %arg7[%c6_122, %c0_123] : memref<18x128xf32, #tpu.memory_space<vmem>>, vector<2x128xf32>
    %c2_124 = arith.constant 2 : index
    %c256_125 = arith.constant 256 : index
    %104 = vector.load %arg8[%c2_124, %c256_125] : memref<8x512xf32, #tpu.memory_space<vmem>>, vector<2x128xf32>
    tpu.vector_store %arg8[%c2_124, %c256_125], %103 {strides = array<i32>} : memref<8x512xf32, #tpu.memory_space<vmem>>, vector<2x128xf32>,
    %c12_126 = arith.constant 12 : index
    %c0_127 = arith.constant 0 : index
    %105 = vector.load %arg7[%c12_126, %c0_127] : memref<18x128xf32, #tpu.memory_space<vmem>>, vector<2x128xf32>
    %c4_128 = arith.constant 4 : index
    %c256_129 = arith.constant 256 : index
    %106 = vector.load %arg8[%c4_128, %c256_129] : memref<8x512xf32, #tpu.memory_space<vmem>>, vector<2x128xf32>
    tpu.vector_store %arg8[%c4_128, %c256_129], %105 {strides = array<i32>} : memref<8x512xf32, #tpu.memory_space<vmem>>, vector<2x128xf32>,
    %c15_130 = arith.constant 15 : index
    %c0_131 = arith.constant 0 : index
    %107 = vector.load %arg7[%c15_130, %c0_131] : memref<18x128xf32, #tpu.memory_space<vmem>>, vector<2x128xf32>
    %c6_132 = arith.constant 6 : index
    %c256_133 = arith.constant 256 : index
    %108 = vector.load %arg8[%c6_132, %c256_133] : memref<8x512xf32, #tpu.memory_space<vmem>>, vector<2x128xf32>
    tpu.vector_store %arg8[%c6_132, %c256_133], %107 {strides = array<i32>} : memref<8x512xf32, #tpu.memory_space<vmem>>, vector<2x128xf32>,
    %c4_134 = arith.constant 4 : index
    %c0_135 = arith.constant 0 : index
    %109 = vector.load %arg7[%c4_134, %c0_135] : memref<18x128xf32, #tpu.memory_space<vmem>>, vector<2x128xf32>
    %c0_136 = arith.constant 0 : index
    %c384_137 = arith.constant 384 : index
    %110 = vector.load %arg8[%c0_136, %c384_137] : memref<8x512xf32, #tpu.memory_space<vmem>>, vector<2x128xf32>
    tpu.vector_store %arg8[%c0_136, %c384_137], %109 {strides = array<i32>} : memref<8x512xf32, #tpu.memory_space<vmem>>, vector<2x128xf32>,
    %c7 = arith.constant 7 : index
    %c0_138 = arith.constant 0 : index
    %111 = vector.load %arg7[%c7, %c0_138] : memref<18x128xf32, #tpu.memory_space<vmem>>, vector<2x128xf32>
    %c2_139 = arith.constant 2 : index
    %c384_140 = arith.constant 384 : index
    %112 = vector.load %arg8[%c2_139, %c384_140] : memref<8x512xf32, #tpu.memory_space<vmem>>, vector<2x128xf32>
    tpu.vector_store %arg8[%c2_139, %c384_140], %111 {strides = array<i32>} : memref<8x512xf32, #tpu.memory_space<vmem>>, vector<2x128xf32>,
    %c13_141 = arith.constant 13 : index
    %c0_142 = arith.constant 0 : index
    %113 = vector.load %arg7[%c13_141, %c0_142] : memref<18x128xf32, #tpu.memory_space<vmem>>, vector<2x128xf32>
    %c4_143 = arith.constant 4 : index
    %c384_144 = arith.constant 384 : index
    %114 = vector.load %arg8[%c4_143, %c384_144] : memref<8x512xf32, #tpu.memory_space<vmem>>, vector<2x128xf32>
    tpu.vector_store %arg8[%c4_143, %c384_144], %113 {strides = array<i32>} : memref<8x512xf32, #tpu.memory_space<vmem>>, vector<2x128xf32>,
    %c16_145 = arith.constant 16 : index
    %c0_146 = arith.constant 0 : index
    %115 = vector.load %arg7[%c16_145, %c0_146] : memref<18x128xf32, #tpu.memory_space<vmem>>, vector<2x128xf32>
    %c6_147 = arith.constant 6 : index
    %c384_148 = arith.constant 384 : index
    %116 = vector.load %arg8[%c6_147, %c384_148] : memref<8x512xf32, #tpu.memory_space<vmem>>, vector<2x128xf32>
    tpu.vector_store %arg8[%c6_147, %c384_148], %115 {strides = array<i32>} : memref<8x512xf32, #tpu.memory_space<vmem>>, vector<2x128xf32>,
    %c0_149 = arith.constant 0 : index
    %c0_150 = arith.constant 0 : index
    %117 = vector.load %arg8[%c0_149, %c0_150] : memref<8x512xf32, #tpu.memory_space<vmem>>, vector<8x512xf32>
    %c0_151 = arith.constant 0 : index
    %c0_152 = arith.constant 0 : index
    %118 = vector.load %arg2[%c0_151, %c0_152] : memref<512x128xf32, #tpu.memory_space<vmem>>, vector<512x128xf32>
    %cst_153 = arith.constant dense<0.000000e+00> : vector<8x128xf32>
    %119 = tpu.matmul %117, %118, %cst_153 {dimension_numbers = #tpu.dot_dimension_numbers<[1], [0], [0], [1], [0, 0, 1, 1], [], []>} : vector<8x512xf32>, vector<512x128xf32>, vector<8x128xf32> -> vector<8x128xf32>
    %120 = vector.broadcast %4 : vector<1x128xf32> to vector<8x128xf32>
    %121 = arith.addf %119, %120 : vector<8x128xf32>
    %cst_154 = arith.constant 0.000000e+00 : f32
    %122 = vector.broadcast %cst_154 : f32 to vector<8x128xf32>
    %123 = arith.maximumf %121, %122 : vector<8x128xf32>
    %cst_155 = arith.constant dense<0.000000e+00> : vector<128xf32>
    %124 = vector.multi_reduction <add>, %123, %cst_155 [0] : vector<8x128xf32> to vector<128xf32>
    %125 = vector.shape_cast %124 : vector<128xf32> to vector<1x128xf32>
    %cst_156 = arith.constant 1.250000e-01 : f32
    %126 = vector.broadcast %cst_156 : f32 to vector<1x128xf32>
    %127 = arith.mulf %125, %126 : vector<1x128xf32>
    %128 = arith.mulf %123, %123 : vector<8x128xf32>
    %cst_157 = arith.constant dense<0.000000e+00> : vector<128xf32>
    %129 = vector.multi_reduction <add>, %128, %cst_157 [0] : vector<8x128xf32> to vector<128xf32>
    %130 = vector.shape_cast %129 : vector<128xf32> to vector<1x128xf32>
    %cst_158 = arith.constant 1.250000e-01 : f32
    %131 = vector.broadcast %cst_158 : f32 to vector<1x128xf32>
    %132 = arith.mulf %130, %131 : vector<1x128xf32>
    %133 = arith.mulf %127, %127 : vector<1x128xf32>
    %134 = arith.subf %132, %133 : vector<1x128xf32>
    %cst_159 = arith.constant 9.99999974E-6 : f32
    %135 = vector.broadcast %cst_159 : f32 to vector<1x128xf32>
    %136 = arith.addf %134, %135 : vector<1x128xf32>
    %137 = math.rsqrt %136 : vector<1x128xf32>
    %138 = arith.mulf %5, %137 : vector<1x128xf32>
    %139 = vector.broadcast %138 : vector<1x128xf32> to vector<8x128xf32>
    %140 = arith.mulf %123, %139 : vector<8x128xf32>
    %141 = arith.mulf %127, %138 : vector<1x128xf32>
    %142 = arith.subf %6, %141 : vector<1x128xf32>
    %143 = vector.broadcast %142 : vector<1x128xf32> to vector<8x128xf32>
    %144 = arith.addf %140, %143 : vector<8x128xf32>
    %c0_160 = arith.constant 0 : index
    %c0_161 = arith.constant 0 : index
    %145 = vector.load %arg9[%c0_160, %c0_161] : memref<8x128xf32, #tpu.memory_space<vmem>>, vector<8x128xf32>
    tpu.vector_store %arg9[%c0_160, %c0_161], %144 {strides = array<i32>} : memref<8x128xf32, #tpu.memory_space<vmem>>, vector<8x128xf32>,
    %c0_162 = arith.constant 0 : index
    %c0_163 = arith.constant 0 : index
    %146 = vector.load %arg9[%c0_162, %c0_163] : memref<8x128xf32, #tpu.memory_space<vmem>>, vector<1x128xf32>
    %c0_164 = arith.constant 0 : index
    %c0_165 = arith.constant 0 : index
    %147 = vector.load %arg10[%c0_164, %c0_165] : memref<2x512xf32, #tpu.memory_space<vmem>>, vector<1x128xf32>
    tpu.vector_store %arg10[%c0_164, %c0_165], %146 {strides = array<i32>} : memref<2x512xf32, #tpu.memory_space<vmem>>, vector<1x128xf32>,
    %c1_166 = arith.constant 1 : index
    %c0_167 = arith.constant 0 : index
    %148 = vector.load %arg9[%c1_166, %c0_167] : memref<8x128xf32, #tpu.memory_space<vmem>>, vector<1x128xf32>
    %c0_168 = arith.constant 0 : index
    %c128_169 = arith.constant 128 : index
    %149 = vector.load %arg10[%c0_168, %c128_169] : memref<2x512xf32, #tpu.memory_space<vmem>>, vector<1x128xf32>
    tpu.vector_store %arg10[%c0_168, %c128_169], %148 {strides = array<i32>} : memref<2x512xf32, #tpu.memory_space<vmem>>, vector<1x128xf32>,
    %c2_170 = arith.constant 2 : index
    %c0_171 = arith.constant 0 : index
    %150 = vector.load %arg9[%c2_170, %c0_171] : memref<8x128xf32, #tpu.memory_space<vmem>>, vector<1x128xf32>
    %c0_172 = arith.constant 0 : index
    %c256_173 = arith.constant 256 : index
    %151 = vector.load %arg10[%c0_172, %c256_173] : memref<2x512xf32, #tpu.memory_space<vmem>>, vector<1x128xf32>
    tpu.vector_store %arg10[%c0_172, %c256_173], %150 {strides = array<i32>} : memref<2x512xf32, #tpu.memory_space<vmem>>, vector<1x128xf32>,
    %c3_174 = arith.constant 3 : index
    %c0_175 = arith.constant 0 : index
    %152 = vector.load %arg9[%c3_174, %c0_175] : memref<8x128xf32, #tpu.memory_space<vmem>>, vector<1x128xf32>
    %c0_176 = arith.constant 0 : index
    %c384_177 = arith.constant 384 : index
    %153 = vector.load %arg10[%c0_176, %c384_177] : memref<2x512xf32, #tpu.memory_space<vmem>>, vector<1x128xf32>
    tpu.vector_store %arg10[%c0_176, %c384_177], %152 {strides = array<i32>} : memref<2x512xf32, #tpu.memory_space<vmem>>, vector<1x128xf32>,
    %c4_178 = arith.constant 4 : index
    %c0_179 = arith.constant 0 : index
    %154 = vector.load %arg9[%c4_178, %c0_179] : memref<8x128xf32, #tpu.memory_space<vmem>>, vector<1x128xf32>
    %c1_180 = arith.constant 1 : index
    %c0_181 = arith.constant 0 : index
    %155 = vector.load %arg10[%c1_180, %c0_181] : memref<2x512xf32, #tpu.memory_space<vmem>>, vector<1x128xf32>
    tpu.vector_store %arg10[%c1_180, %c0_181], %154 {strides = array<i32>} : memref<2x512xf32, #tpu.memory_space<vmem>>, vector<1x128xf32>,
    %c5_182 = arith.constant 5 : index
    %c0_183 = arith.constant 0 : index
    %156 = vector.load %arg9[%c5_182, %c0_183] : memref<8x128xf32, #tpu.memory_space<vmem>>, vector<1x128xf32>
    %c1_184 = arith.constant 1 : index
    %c128_185 = arith.constant 128 : index
    %157 = vector.load %arg10[%c1_184, %c128_185] : memref<2x512xf32, #tpu.memory_space<vmem>>, vector<1x128xf32>
    tpu.vector_store %arg10[%c1_184, %c128_185], %156 {strides = array<i32>} : memref<2x512xf32, #tpu.memory_space<vmem>>, vector<1x128xf32>,
    %c6_186 = arith.constant 6 : index
    %c0_187 = arith.constant 0 : index
    %158 = vector.load %arg9[%c6_186, %c0_187] : memref<8x128xf32, #tpu.memory_space<vmem>>, vector<1x128xf32>
    %c1_188 = arith.constant 1 : index
    %c256_189 = arith.constant 256 : index
    %159 = vector.load %arg10[%c1_188, %c256_189] : memref<2x512xf32, #tpu.memory_space<vmem>>, vector<1x128xf32>
    tpu.vector_store %arg10[%c1_188, %c256_189], %158 {strides = array<i32>} : memref<2x512xf32, #tpu.memory_space<vmem>>, vector<1x128xf32>,
    %c7_190 = arith.constant 7 : index
    %c0_191 = arith.constant 0 : index
    %160 = vector.load %arg9[%c7_190, %c0_191] : memref<8x128xf32, #tpu.memory_space<vmem>>, vector<1x128xf32>
    %c1_192 = arith.constant 1 : index
    %c384_193 = arith.constant 384 : index
    %161 = vector.load %arg10[%c1_192, %c384_193] : memref<2x512xf32, #tpu.memory_space<vmem>>, vector<1x128xf32>
    tpu.vector_store %arg10[%c1_192, %c384_193], %160 {strides = array<i32>} : memref<2x512xf32, #tpu.memory_space<vmem>>, vector<1x128xf32>,
    %c0_194 = arith.constant 0 : index
    %c0_195 = arith.constant 0 : index
    %162 = vector.load %arg10[%c0_194, %c0_195] : memref<2x512xf32, #tpu.memory_space<vmem>>, vector<2x512xf32>
    %c0_196 = arith.constant 0 : index
    %c0_197 = arith.constant 0 : index
    %163 = vector.load %arg3[%c0_196, %c0_197] : memref<512x4xf32, #tpu.memory_space<vmem>>, vector<512x4xf32>
    %cst_198 = arith.constant dense<0.000000e+00> : vector<2x4xf32>
    %164 = tpu.matmul %162, %163, %cst_198 {dimension_numbers = #tpu.dot_dimension_numbers<[1], [0], [0], [1], [0, 0, 1, 1], [], []>} : vector<2x512xf32>, vector<512x4xf32>, vector<2x4xf32> -> vector<2x4xf32>
    %165 = vector.broadcast %7 : vector<1x4xf32> to vector<2x4xf32>
    %166 = arith.addf %164, %165 : vector<2x4xf32>
    %cst_199 = arith.constant dense<0xFF800000> : vector<2xf32>
    %167 = vector.multi_reduction <maximumf>, %166, %cst_199 [1] : vector<2x4xf32> to vector<2xf32>
    %168 = vector.shape_cast %167 : vector<2xf32> to vector<2x1xf32>
    %169 = vector.broadcast %168 : vector<2x1xf32> to vector<2x4xf32>
    %170 = arith.subf %166, %169 : vector<2x4xf32>
    %171 = math.exp %170 : vector<2x4xf32>
    %cst_200 = arith.constant dense<0.000000e+00> : vector<2xf32>
    %172 = vector.multi_reduction <add>, %171, %cst_200 [1] : vector<2x4xf32> to vector<2xf32>
    %173 = vector.shape_cast %172 : vector<2xf32> to vector<2x1xf32>
    %174 = vector.broadcast %173 : vector<2x1xf32> to vector<2x4xf32>
    %175 = arith.divf %171, %174 : vector<2x4xf32>
    %c0_201 = arith.constant 0 : index
    %c0_202 = arith.constant 0 : index
    %176 = vector.load %arg5[%c0_201, %c0_202] : memref<2x4xf32, #tpu.memory_space<vmem>>, vector<2x4xf32>
    tpu.vector_store %arg5[%c0_201, %c0_202], %175 {strides = array<i32>} : memref<2x4xf32, #tpu.memory_space<vmem>>, vector<2x4xf32>,
    return
  }
}

</mosaic_0001>

<bundles_post_ra>
// kernel: dqn_forward.1
= control target key start
LH: loop header
LB: loop body
LE: loop exit
PB: predicated region body
PF: predicated region fallthrough
CT: control target
= control target key end

     0   :  { %10 = vsyncpa [#allocation8], 0  ;;  %s1840_s0 = inlined_call_operand.vmem [shape: f32[32,128], index: 0, kind: input, shape index: {}]   ;;  %s1841_s1 = inlined_call_operand.vmem [shape: f32[512,128], index: 1, kind: input, shape index: {}]   ;;  %s1842_s2 = inlined_call_operand.hbm [shape: f32[512,128], index: 2, kind: input, shape index: {}]   ;;  %s1843_s3 = inlined_call_operand.vmem [shape: f32[512,4], index: 3, kind: input, shape index: {}]   ;;  %s1844_s4 = inlined_call_operand.vmem [shape: f32[7,128], index: 4, kind: input, shape index: {}]   ;;  %s1845_s5 = inlined_call_operand.hbm [shape: f32[2,4], index: 5, kind: output, shape index: {}]  }
   0x1   :  { %11 = vsyncpa [#allocation9], 0  ;;  %s1318_s18 = smov [#allocation7]  }
   0x2   :  { %s21_s19 = sshll.u32 %s1318_s18, 4  ;;  %s22_s19 = int_to_ptr.vmem [resolvable:$true] %s21_s19 }
   0x3   :  { %s1282_s20 = scalar_lea.vmem %s22_s19, 8192  ;;  %p1287_p1 = scmp.lt.s32.totalorder %s22_s19, %s22_s19 }
   0x4   :  { %p1283_p0 = scmp.ne.s32.totalorder %s22_s19, %s1282_s20  ;;  %p1288_p2 = scmp.lt.s32.totalorder %s1282_s20, %s1282_s20 }
   0x6   :  { %p1289_p3 = por %p1288_p2, %p1287_p1 }
   0x8   :  { %p1290_p4 = pnand %p1289_p3, %p1283_p0 }
   0xa   :  { %1293 = shalt.err (!%p1290_p4)
}
   0xb   :  { %s1319_s21 = smov 128   ;;  %s1320_s22 = smov 8  }
   0xc   :  { %27 = dma.hbm_to_vmem [thread:$0]  %s1842_s2, 8192, %s22_s19, [#allocation8], %s1319_s21, %s1319_s21, %s1320_s22  }
   0xd   :  { %1314 = dma.done.wait [#allocation8], 8192  }
   0xe   :  { %1315 = vsyncadd [#allocation8], 4294959104  ;;  %v195_v0 = vld [vmem:[%s1841_s1 + $0xf8] sm:$0xff]  ;;  %v194_v4 = vld [vmem:[%s1841_s1 + $0xf0] sm:$0xff]  ;;  %vm396_vm0 = vcmask 1041408   ;;  %vm1010_vm1 = vcmask 25600  }
   0xf   :  { %v227_v1 = vld [vmem:[%s1841_s1 + $0x1f8] sm:$0xff]  ;;  %1038 = vmatprep.subr.mxu0 %v195_v0  ;;  %v226_v5 = vld [vmem:[%s1841_s1 + $0x1f0] sm:$0xff]  ;;  %v193_v8 = vld [vmem:[%s1841_s1 + $0xe8] sm:$0xff] }
  0x10   :  { %v179_v2 = vld [vmem:[%s1841_s1 + $0x78] sm:$0xff]  ;;  %1079 = vmatprep.subr.mxu1 %v227_v1  ;;  %v178_v6 = vld [vmem:[%s1841_s1 + $0x70] sm:$0xff]  ;;  %v225_v9 = vld [vmem:[%s1841_s1 + $0x1e8] sm:$0xff] }
  0x11   :  { %v211_v3 = vld [vmem:[%s1841_s1 + $0x178] sm:$0xff]  ;;  %1039 = vmatpush3.msra.mxu0 %v179_v2  ;;  %v210_v7 = vld [vmem:[%s1841_s1 + $0x170] sm:$0xff]  ;;  %v177_v10 = vld [vmem:[%s1841_s1 + $0x68] sm:$0xff] }
  0x12   :  { %1080 = vmatpush3.msra.mxu1 %v211_v3  ;;  %1040 = vmatprep.subr.mxu0 %v194_v4  ;;  %v209_v11 = vld [vmem:[%s1841_s1 + $0x168] sm:$0xff]  ;;  %v192_v12 = vld [vmem:[%s1841_s1 + $0xe0] sm:$0xff]  ;;  %v191_v16 = vld [vmem:[%s1841_s1 + $0xd8] sm:$0xff] }
  0x13   :  { %1081 = vmatprep.subr.mxu1 %v226_v5  ;;  %1041 = vmatpush3.msra.mxu0 %v178_v6  ;;  %v224_v13 = vld [vmem:[%s1841_s1 + $0x1e0] sm:$0xff]  ;;  %v223_v17 = vld [vmem:[%s1841_s1 + $0x1d8] sm:$0xff]  ;;  %v190_v20 = vld [vmem:[%s1841_s1 + $0xd0] sm:$0xff] }
  0x14   :  { %1082 = vmatpush3.msra.mxu1 %v210_v7  ;;  %1042 = vmatprep.subr.mxu0 %v193_v8  ;;  %v176_v14 = vld [vmem:[%s1841_s1 + $0x60] sm:$0xff]  ;;  %v175_v18 = vld [vmem:[%s1841_s1 + $0x58] sm:$0xff]  ;;  %v222_v21 = vld [vmem:[%s1841_s1 + $0x1d0] sm:$0xff] }
  0x15   :  { %1083 = vmatprep.subr.mxu1 %v225_v9  ;;  %v208_v15 = vld [vmem:[%s1841_s1 + $0x160] sm:$0xff]  ;;  %1043 = vmatpush3.msra.mxu0 %v177_v10  ;;  %v207_v19 = vld [vmem:[%s1841_s1 + $0x158] sm:$0xff]  ;;  %v174_v22 = vld [vmem:[%s1841_s1 + $0x50] sm:$0xff] }
  0x16   :  { %1084 = vmatpush3.msra.mxu1 %v209_v11  ;;  %1044 = vmatprep.subr.mxu0 %v192_v12  ;;  %v206_v23 = vld [vmem:[%s1841_s1 + $0x150] sm:$0xff]  ;;  %v189_v24 = vld [vmem:[%s1841_s1 + $0xc8] sm:$0xff]  ;;  %v188_v28 = vld [vmem:[%s1841_s1 + $0xc0] sm:$0xff] }
  0x17   :  { %1085 = vmatprep.subr.mxu1 %v224_v13  ;;  %1045 = vmatpush3.msra.mxu0 %v176_v14  ;;  %v221_v25 = vld [vmem:[%s1841_s1 + $0x1c8] sm:$0xff]  ;;  %v220_v29 = vld [vmem:[%s1841_s1 + $0x1c0] sm:$0xff]  ;;  %v187_v32 = vld [vmem:[%s1841_s1 + $0xb8] sm:$0xff] }
  0x18   :  { %1086 = vmatpush3.msra.mxu1 %v208_v15  ;;  %1046 = vmatprep.subr.mxu0 %v191_v16  ;;  %v173_v26 = vld [vmem:[%s1841_s1 + $0x48] sm:$0xff]  ;;  %v172_v30 = vld [vmem:[%s1841_s1 + $0x40] sm:$0xff]  ;;  %v219_v33 = vld [vmem:[%s1841_s1 + $0x1b8] sm:$0xff] }
  0x19   :  { %1087 = vmatprep.subr.mxu1 %v223_v17  ;;  %1047 = vmatpush3.msra.mxu0 %v175_v18  ;;  %v205_v27 = vld [vmem:[%s1841_s1 + $0x148] sm:$0xff]  ;;  %v204_v31 = vld [vmem:[%s1841_s1 + $0x140] sm:$0xff]  ;;  %v171_v34 = vld [vmem:[%s1841_s1 + $0x38] sm:$0xff] }
  0x1a   :  { %1088 = vmatpush3.msra.mxu1 %v207_v19  ;;  %1048 = vmatprep.subr.mxu0 %v190_v20  ;;  %v203_v35 = vld [vmem:[%s1841_s1 + $0x138] sm:$0xff]  ;;  %v186_v36 = vld [vmem:[%s1841_s1 + $0xb0] sm:$0xff]  ;;  %v185_v40 = vld [vmem:[%s1841_s1 + $0xa8] sm:$0xff] }
  0x1b   :  { %1089 = vmatprep.subr.mxu1 %v222_v21  ;;  %1049 = vmatpush3.msra.mxu0 %v174_v22  ;;  %v218_v37 = vld [vmem:[%s1841_s1 + $0x1b0] sm:$0xff]  ;;  %v217_v41 = vld [vmem:[%s1841_s1 + $0x1a8] sm:$0xff]  ;;  %v184_v44 = vld [vmem:[%s1841_s1 + $0xa0] sm:$0xff] }
  0x1c   :  { %1090 = vmatpush3.msra.mxu1 %v206_v23  ;;  %1050 = vmatprep.subr.mxu0 %v189_v24  ;;  %v170_v38 = vld [vmem:[%s1841_s1 + $0x30] sm:$0xff]  ;;  %v169_v42 = vld [vmem:[%s1841_s1 + $0x28] sm:$0xff]  ;;  %v216_v45 = vld [vmem:[%s1841_s1 + $0x1a0] sm:$0xff] }
  0x1d   :  { %1091 = vmatprep.subr.mxu1 %v221_v25  ;;  %1051 = vmatpush3.msra.mxu0 %v173_v26  ;;  %v202_v39 = vld [vmem:[%s1841_s1 + $0x130] sm:$0xff]  ;;  %v201_v43 = vld [vmem:[%s1841_s1 + $0x128] sm:$0xff]  ;;  %v168_v46 = vld [vmem:[%s1841_s1 + $0x20] sm:$0xff] }
  0x1e   :  { %1092 = vmatpush3.msra.mxu1 %v205_v27  ;;  %1052 = vmatprep.subr.mxu0 %v188_v28  ;;  %v200_v47 = vld [vmem:[%s1841_s1 + $0x120] sm:$0xff]  ;;  %v183_v48 = vld [vmem:[%s1841_s1 + $0x98] sm:$0xff]  ;;  %v72_v54 = vld [vmem:[%s1840_s0 + $0x9] sm:$0x7] }
  0x1f   :  { %1093 = vmatprep.subr.mxu1 %v220_v29  ;;  %1053 = vmatpush3.msra.mxu0 %v172_v30  ;;  %v215_v49 = vld [vmem:[%s1841_s1 + $0x198] sm:$0xff]  ;;  %v65_v52 = vld [vmem:[%s1840_s0 + $0x1] sm:$0x7]  ;;  %v67_v53 = vld [vmem:[%s1840_s0 + $0x5] sm:$0x7]  ;;  %v74_v58 = vrot.slane %v72_v54, 2 }
  0x20   :  { %1094 = vmatpush3.msra.mxu1 %v204_v31  ;;  %1054 = vmatprep.subr.mxu0 %v187_v32  ;;  %v167_v50 = vld [vmem:[%s1841_s1 + $0x18] sm:$0xff]  ;;  %v182_v55 = vld [vmem:[%s1841_s1 + $0x90] sm:$0xff]  ;;  %66 = vst [vmem:[#allocation2 + $0x8] sm:$0x7] %v65_v52  ;;  %v69_v57 = vrot.slane %v67_v53, 5  ;;  %v181_v1 = vld [vmem:[%s1841_s1 + $0x88] sm:$0xff] }
  0x21   :  { %1095 = vmatprep.subr.mxu1 %v219_v33  ;;  %1055 = vmatpush3.msra.mxu0 %v171_v34  ;;  %v199_v51 = vld [vmem:[%s1841_s1 + $0x118] sm:$0xff]  ;;  %v214_v56 = vld [vmem:[%s1841_s1 + $0x190] sm:$0xff]  ;;  %v123_v59 = vld [vmem:[%s1840_s0 + $0x5] sm:$0x7] }
  0x22   :  { %1096 = vmatpush3.msra.mxu1 %v203_v35  ;;  %1056 = vmatprep.subr.mxu0 %v186_v36  ;;  %v166_v60 = vld [vmem:[%s1841_s1 + $0x10] sm:$0xff]  ;;  %124 = vst [vmem:[#allocation2 + $0x18] sm:$0x7] %v123_v59  ;;  %v125_v62 = vld [vmem:[%s1840_s0 + $0x9] sm:$0x7]  ;;  %v180_v13 = vld [vmem:[%s1841_s1 + $0x80] sm:$0xff] }
  0x23   :  { %1097 = vmatprep.subr.mxu1 %v218_v37  ;;  %1057 = vmatpush3.msra.mxu0 %v170_v38  ;;  %v198_v61 = vld [vmem:[%s1841_s1 + $0x110] sm:$0xff]  ;;  %v130_v63 = vld [vmem:[%s1840_s0 + $0xd] sm:$0x7]  ;;  %v36_v0 = vld [vmem:[%s1840_s0] sm:$0x7]  ;;  %v127_v3 = vrot.slane %v125_v62, 5 }
  0x24   :  { %1098 = vmatpush3.msra.mxu1 %v202_v39  ;;  %1058 = vmatprep.subr.mxu0 %v185_v40  ;;  %v213_v2 = vld [vmem:[%s1841_s1 + $0x188] sm:$0xff]  ;;  %71 = vst [vmem:[#allocation2 + $0x8] sm:$0x38] %v69_v57  ;;  %76 = vst [vmem:[#allocation2 + $0x38] ss:$-44 sps:$4 sm:$0xc1] %v74_v58  }
  0x25   :  { %1099 = vmatprep.subr.mxu1 %v217_v41  ;;  %1059 = vmatpush3.msra.mxu0 %v169_v42  ;;  %v132_v4 = vrot.slane %v130_v63, 2  ;;  %37 = vst [vmem:[#allocation2 + $0x10] sm:$0x7] %v36_v0  ;;  %v38_v5 = vld [vmem:[%s1840_s0 + $0x4] sm:$0x7]  ;;  %v165_v7 = vld [vmem:[%s1841_s1 + $0x8] sm:$0xff] }
  0x26   :  { %1100 = vmatpush3.msra.mxu1 %v201_v43  ;;  %1060 = vmatprep.subr.mxu0 %v184_v44  ;;  %v43_v6 = vld [vmem:[%s1840_s0 + $0x8] sm:$0x7]  ;;  %v40_v9 = vrot.slane %v38_v5, 5  ;;  %v94_v11 = vld [vmem:[%s1840_s0 + $0x4] sm:$0x7]  ;;  %v532_v62 = vld [vmem:[#allocation7 + $0x70] sm:$0xff] }
  0x27   :  { %1101 = vmatprep.subr.mxu1 %v216_v45  ;;  %1061 = vmatpush3.msra.mxu0 %v168_v46  ;;  %v197_v8 = vld [vmem:[%s1841_s1 + $0x108] sm:$0xff]  ;;  %v45_v10 = vrot.slane %v43_v6, 2  ;;  %v212_v14 = vld [vmem:[%s1841_s1 + $0x180] sm:$0xff]  ;;  %129 = vst [vmem:[#allocation2 + $0x18] sm:$0x38] %v127_v3  ;;  %v564_v63 = vld [vmem:[#allocation7 + $0x170] sm:$0xff] }
  0x28   :  { %1102 = vmatpush3.msra.mxu1 %v200_v47  ;;  %1062 = vmatprep.subr.mxu0 %v183_v48  ;;  %v96_v12 = vld [vmem:[%s1840_s0 + $0x8] sm:$0x7]  ;;  %134 = vst [vmem:[#allocation2 + $0x40] ss:$-36 sps:$4 sm:$0xc1] %v132_v4   ;;  %v164_v18 = vld [vmem:[%s1841_s1] sm:$0xff] }
  0x29   :  { %1103 = vmatprep.subr.mxu1 %v215_v49  ;;  %1063 = vmatpush3.msra.mxu0 %v167_v50  ;;  %95 = vst [vmem:[#allocation2 + $0x20] sm:$0x7] %v94_v11  ;;  %v98_v15 = vrot.slane %v96_v12, 5  ;;  %v101_v16 = vld [vmem:[%s1840_s0 + $0xc] sm:$0x7]  ;;  %v196_v23 = vld [vmem:[%s1841_s1 + $0x100] sm:$0xff] }
  0x2a   :  { %1104 = vmatpush3.msra.mxu1 %v199_v51  ;;  %v78_v17 = vld [vmem:[%s1840_s0 + $0x11] sm:$0x7]  ;;  %1064 = vmatprep.subr.mxu0 %v182_v55  ;;  %42 = vst [vmem:[#allocation2 + $0x10] sm:$0x38] %v40_v9  ;;  %v103_v19 = vrot.slane %v101_v16, 2  ;;  %v581_v57 = vld [vmem:[#allocation7 + $0x1f8] sm:$0xff] }
  0x2b   :  { %1105 = vmatprep.subr.mxu1 %v214_v56  ;;  %47 = vst [vmem:[#allocation2] ss:$20 sps:$4 sm:$0xc1] %v45_v10   ;;  %v80_v20 = vrot.slane %v78_v17, 7  ;;  %v83_v21 = vld [vmem:[%s1840_s0 + $0x15] sm:$0x7]  ;;  %1065 = vmatpush3.msra.mxu0 %v166_v60 }
  0x2c   :  { %v88_v22 = vld [vmem:[%s1840_s0 + $0x19] sm:$0x7]  ;;  %1106 = vmatpush3.msra.mxu1 %v198_v61  ;;  %100 = vst [vmem:[#allocation2 + $0x20] sm:$0x38] %v98_v15  ;;  %v85_v24 = vrot.slane %v83_v21, 4  ;;  %1066 = vmatprep.subr.mxu0 %v181_v1  ;;  %v153_v36 = vld [vmem:[#allocation2 + $0x8] sm:$0xff] }
  0x2d   :  { %v90_v25 = vrot.slane %v88_v22, 1  ;;  %v136_v26 = vld [vmem:[%s1840_s0 + $0x15] sm:$0x7]  ;;  %v141_v27 = vld [vmem:[%s1840_s0 + $0x19] sm:$0x7]  ;;  %1107 = vmatprep.subr.mxu1 %v213_v2  ;;  %1067 = vmatpush3.msra.mxu0 %v165_v7  ;;  %v549_v56 = vld [vmem:[#allocation7 + $0xf8] sm:$0xff] }
  0x2e   :  { %105 = vst [vmem:[#allocation2 + $0x30] ss:$-12 sps:$4 sm:$0xc1] %v103_v19   ;;  %82 = vst [vmem:[#allocation2 + $0x38] sm:$0xe] %v80_v20  ;;  %v138_v28 = vrot.slane %v136_v26, 7  ;;  %1108 = vmatpush3.msra.mxu1 %v197_v8  ;;  %1068 = vmatprep.subr.mxu0 %v180_v13 }
  0x2f   :  { %v143_v29 = vrot.slane %v141_v27, 4  ;;  %v146_v30 = vld [vmem:[%s1840_s0 + $0x1d] sm:$0x7]  ;;  %v49_v31 = vld [vmem:[%s1840_s0 + $0x10] sm:$0x7]  ;;  %1109 = vmatprep.subr.mxu1 %v212_v14  ;;  %1069 = vmatpush3.msra.mxu0 %v164_v18  ;;  %v533_v58 = vld [vmem:[#allocation7 + $0x78] sm:$0xff] }
  0x30   :  { %87 = vst [vmem:[#allocation2 + $0x38] sm:$0x70] %v85_v24  ;;  %92 = vst [vmem:[#allocation2 + $0x28] ss:$20 sps:$4 sm:$0x83] %v90_v25   ;;  %v148_v32 = vrot.slane %v146_v30, 1  ;;  %296 = vmatprep.mubr.f32.mxu0 %v153_v36  ;;  %1110 = vmatpush3.msra.mxu1 %v196_v23 }
  0x31   :  { %v51_v33 = vrot.slane %v49_v31, 7  ;;  %v54_v34 = vld [vmem:[%s1840_s0 + $0x14] sm:$0x7]  ;;  %v59_v35 = vld [vmem:[%s1840_s0 + $0x18] sm:$0x7]  ;;  %1120 = vmatprep.subr.mxu0 %v549_v56  ;;  %1155 = vmatprep.subr.mxu1 %v581_v57  ;;  %v565_v59 = vld [vmem:[#allocation7 + $0x178] sm:$0xff]  ;;  %v228_v56 = vlaneseq }
  0x32   :  { %140 = vst [vmem:[#allocation2 + $0x40] sm:$0xe] %v138_v28  ;;  %145 = vst [vmem:[#allocation2 + $0x40] sm:$0x70] %v143_v29  ;;  %v56_v37 = vrot.slane %v54_v34, 4  ;;  %v61_v38 = vrot.slane %v59_v35, 1 }
  0x33   :  { %v107_v39 = vld [vmem:[%s1840_s0 + $0x14] sm:$0x7]  ;;  %150 = vst [vmem:[#allocation2 + $0x50] ss:$-12 sps:$4 sm:$0x83] %v148_v32   ;;  %v155_v43 = vld [vmem:[#allocation2 + $0x18] sm:$0xff] }
  0x34   :  { %53 = vst [vmem:[#allocation2] sm:$0xe] %v51_v33  ;;  %v109_v40 = vrot.slane %v107_v39, 7  ;;  %v112_v41 = vld [vmem:[%s1840_s0 + $0x18] sm:$0x7]  ;;  %376 = vmatprep.mubr.f32.mxu1 %v155_v43  ;;  %v152_v46 = vld [vmem:[#allocation2 + $0x10] sm:$0xff] }
  0x35   :  { %v117_v42 = vld [vmem:[%s1840_s0 + $0x1c] sm:$0x7]  ;;  %58 = vst [vmem:[#allocation2] sm:$0x70] %v56_v37  ;;  %v114_v44 = vrot.slane %v112_v41, 4  ;;  %297 = vmatmul.mubr.f32.vlgmr.msra.gmra.mxu0 %v152_v46  ;;  %v154_v47 = vld [vmem:[#allocation2 + $0x20] sm:$0xff] }
  0x36   :  { %63 = vst [vmem:[#allocation2 + $0x58] ss:$-84 sps:$4 sm:$0x83] %v61_v38   ;;  %v119_v45 = vrot.slane %v117_v42, 1  ;;  %111 = vst [vmem:[#allocation2 + $0x30] sm:$0xe] %v109_v40  ;;  %377 = vmatmul.mubr.f32.vlgmr.msra.gmra.mxu1 %v154_v47  ;;  %1121 = vmatpush3.msra.mxu0 %v533_v58 }
  0x37   :  { %116 = vst [vmem:[#allocation2 + $0x30] sm:$0x70] %v114_v44  ;;  %v157_v48 = vld [vmem:[#allocation2 + $0x38] sm:$0xff]  ;;  %v161_v50 = vld [vmem:[#allocation2 + $0x28] sm:$0x3]  ;;  %1156 = vmatpush3.msra.mxu1 %v565_v59  ;;  %v547_v0 = vld [vmem:[#allocation7 + $0xe8] sm:$0xff] }
  0x38   :  { %121 = vst [vmem:[#allocation2 + $0x48] ss:$-20 sps:$4 sm:$0x83] %v119_v45   ;;  %301 = vmatprep.mubr.f32.mxu0 %v157_v48  ;;  %v548_v60 = vld [vmem:[#allocation7 + $0xf0] sm:$0xff]  ;;  %v579_v1 = vld [vmem:[#allocation7 + $0x1e8] sm:$0xff]  ;;  %v546_v4 = vld [vmem:[#allocation7 + $0xe0] sm:$0xff] }
  0x39   :  { %v580_v61 = vld [vmem:[#allocation7 + $0x1f0] sm:$0xff]  ;;  %1122 = vmatprep.subr.mxu0 %v548_v60  ;;  %v531_v2 = vld [vmem:[#allocation7 + $0x68] sm:$0xff]  ;;  %v578_v5 = vld [vmem:[#allocation7 + $0x1e0] sm:$0xff]  ;;  %v1620_v57 = vshrl.u32 %v228_v56, 7 }
  0x3a   :  { %v159_v49 = vld [vmem:[#allocation2 + $0x40] sm:$0xff]  ;;  %v163_v52 = vld [vmem:[#allocation2 + $0x50] sm:$0x3]  ;;  %1157 = vmatprep.subr.mxu1 %v580_v61  ;;  %1123 = vmatpush3.msra.mxu0 %v532_v62  ;;  %v530_v6 = vld [vmem:[#allocation7 + $0x60] sm:$0xff] }
  0x3b   :  { %381 = vmatprep.mubr.f32.mxu1 %v159_v49  ;;  %1158 = vmatpush3.msra.mxu1 %v564_v63  ;;  %v563_v3 = vld [vmem:[#allocation7 + $0x168] sm:$0xff]  ;;  %v562_v7 = vld [vmem:[#allocation7 + $0x160] sm:$0xff]  ;;  %v545_v8 = vld [vmem:[#allocation7 + $0xd8] sm:$0xff]  ;;  %v230_v59 = vsub.s32 0, %v1620_v57  ;;  %v438_v56 = vsub.s32 2, %v1620_v57 }
  0x3c   :  { %1124 = vmatprep.subr.mxu0 %v547_v0  ;;  %1159 = vmatprep.subr.mxu1 %v579_v1  ;;  %v577_v9 = vld [vmem:[#allocation7 + $0x1d8] sm:$0xff]  ;;  %v544_v12 = vld [vmem:[#allocation7 + $0xd0] sm:$0xff]  ;;  %v543_v16 = vld [vmem:[#allocation7 + $0xc8] sm:$0xff] }
  0x3d   :  { %v156_v51 = vld [vmem:[#allocation2] sm:$0xff]  ;;  %v160_v54 = vld [vmem:[#allocation2 + $0x58] sm:$0x3]  ;;  %1125 = vmatpush3.msra.mxu0 %v531_v2  ;;  %1160 = vmatpush3.msra.mxu1 %v563_v3  ;;  %v575_v17 = vld [vmem:[#allocation7 + $0x1c8] sm:$0xff] }
  0x3e   :  { %302 = vmatmul.mubr.f32.gmra.mxu0 %v156_v51  ;;  %1126 = vmatprep.subr.mxu0 %v546_v4  ;;  %v529_v10 = vld [vmem:[#allocation7 + $0x58] sm:$0xff]  ;;  %v576_v13 = vld [vmem:[#allocation7 + $0x1d0] sm:$0xff]  ;;  %v527_v18 = vld [vmem:[#allocation7 + $0x48] sm:$0xff] }
  0x3f   :  { %v158_v53 = vld [vmem:[#allocation2 + $0x30] sm:$0xff]  ;;  %306 = vmatprep.mubr.f32.mxu0 %v161_v50  ;;  %v162_v55 = vld [vmem:[#allocation2 + $0x48] sm:$0x3]  ;;  %1161 = vmatprep.subr.mxu1 %v578_v5  ;;  %v561_v11 = vld [vmem:[#allocation7 + $0x158] sm:$0xff] }
  0x40   :  { %382 = vmatmul.mubr.f32.gmra.mxu1 %v158_v53  ;;  %1127 = vmatpush3.msra.mxu0 %v530_v6  ;;  %v528_v14 = vld [vmem:[#allocation7 + $0x50] sm:$0xff]  ;;  %v559_v19 = vld [vmem:[#allocation7 + $0x148] sm:$0xff]  ;;  %v542_v20 = vld [vmem:[#allocation7 + $0xc0] sm:$0xff] }
  0x41   :  { %386 = vmatprep.mubr.f32.mxu1 %v163_v52  ;;  %1162 = vmatpush3.msra.mxu1 %v562_v7  ;;  %v560_v15 = vld [vmem:[#allocation7 + $0x150] sm:$0xff]  ;;  %v574_v21 = vld [vmem:[#allocation7 + $0x1c0] sm:$0xff]  ;;  %v541_v24 = vld [vmem:[#allocation7 + $0xb8] sm:$0xff] }
  0x42   :  { %307 = vmatmul.mubr.f32.gmra.mxu0 %v160_v54  ;;  %1128 = vmatprep.subr.mxu0 %v545_v8  ;;  %v526_v22 = vld [vmem:[#allocation7 + $0x40] sm:$0xff]  ;;  %v573_v25 = vld [vmem:[#allocation7 + $0x1b8] sm:$0xff]  ;;  %v540_v28 = vld [vmem:[#allocation7 + $0xb0] sm:$0xff] }
  0x43   :  { %1163 = vmatprep.subr.mxu1 %v577_v9  ;;  %1129 = vmatpush3.msra.mxu0 %v529_v10  ;;  %v558_v23 = vld [vmem:[#allocation7 + $0x140] sm:$0xff]  ;;  %v525_v26 = vld [vmem:[#allocation7 + $0x38] sm:$0xff]  ;;  %v572_v29 = vld [vmem:[#allocation7 + $0x1b0] sm:$0xff] }
  0x44   :  { %387 = vmatmul.mubr.f32.gmra.mxu1 %v162_v55  ;;  %1130 = vmatprep.subr.mxu0 %v544_v12  ;;  %v557_v27 = vld [vmem:[#allocation7 + $0x138] sm:$0xff]  ;;  %v524_v30 = vld [vmem:[#allocation7 + $0x30] sm:$0xff]  ;;  %v539_v32 = vld [vmem:[#allocation7 + $0xa8] sm:$0xff] }
  0x45   :  { %1164 = vmatpush3.msra.mxu1 %v561_v11  ;;  %1131 = vmatpush3.msra.mxu0 %v528_v14  ;;  %v556_v31 = vld [vmem:[#allocation7 + $0x130] sm:$0xff]  ;;  %v571_v33 = vld [vmem:[#allocation7 + $0x1a8] sm:$0xff]  ;;  %v538_v36 = vld [vmem:[#allocation7 + $0xa0] sm:$0xff] }
  0x46   :  { %1165 = vmatprep.subr.mxu1 %v576_v13  ;;  %1132 = vmatprep.subr.mxu0 %v543_v16  ;;  %v523_v34 = vld [vmem:[#allocation7 + $0x28] sm:$0xff]  ;;  %v570_v37 = vld [vmem:[#allocation7 + $0x1a0] sm:$0xff]  ;;  %v537_v40 = vld [vmem:[#allocation7 + $0x98] sm:$0xff] }
  0x47   :  { %1166 = vmatpush3.msra.mxu1 %v560_v15  ;;  %1133 = vmatpush3.msra.mxu0 %v527_v18  ;;  %v555_v35 = vld [vmem:[#allocation7 + $0x128] sm:$0xff]  ;;  %v522_v38 = vld [vmem:[#allocation7 + $0x20] sm:$0xff]  ;;  %v569_v41 = vld [vmem:[#allocation7 + $0x198] sm:$0xff] }
  0x48   :  { %1167 = vmatprep.subr.mxu1 %v575_v17  ;;  %1134 = vmatprep.subr.mxu0 %v542_v20  ;;  %v554_v39 = vld [vmem:[#allocation7 + $0x120] sm:$0xff]  ;;  %v521_v42 = vld [vmem:[#allocation7 + $0x18] sm:$0xff]  ;;  %v536_v44 = vld [vmem:[#allocation7 + $0x90] sm:$0xff] }
  0x49   :  { %1168 = vmatpush3.msra.mxu1 %v559_v19  ;;  %1135 = vmatpush3.msra.mxu0 %v526_v22  ;;  %v553_v43 = vld [vmem:[#allocation7 + $0x118] sm:$0xff]  ;;  %v568_v45 = vld [vmem:[#allocation7 + $0x190] sm:$0xff]  ;;  %v535_v48 = vld [vmem:[#allocation7 + $0x88] sm:$0xff] }
  0x4a   :  { %1169 = vmatprep.subr.mxu1 %v574_v21  ;;  %1136 = vmatprep.subr.mxu0 %v541_v24  ;;  %v520_v46 = vld [vmem:[#allocation7 + $0x10] sm:$0xff]  ;;  %v567_v49 = vld [vmem:[#allocation7 + $0x188] sm:$0xff]  ;;  %v534_v52 = vld [vmem:[#allocation7 + $0x80] sm:$0xff] }
  0x4b   :  { %1170 = vmatpush3.msra.mxu1 %v558_v23  ;;  %1137 = vmatpush3.msra.mxu0 %v525_v26  ;;  %v552_v47 = vld [vmem:[#allocation7 + $0x110] sm:$0xff]  ;;  %v519_v50 = vld [vmem:[#allocation7 + $0x8] sm:$0xff]  ;;  %v566_v53 = vld [vmem:[#allocation7 + $0x180] sm:$0xff] }
  0x4c   :  { %1171 = vmatprep.subr.mxu1 %v573_v25  ;;  %1138 = vmatprep.subr.mxu0 %v540_v28  ;;  %v551_v51 = vld [vmem:[#allocation7 + $0x108] sm:$0xff]  ;;  %v518_v54 = vld [vmem:[#allocation7] sm:$0xff]  ;;  %v1626_v60 = vld [vmem:[%s1844_s4] sm:$0x7f] }
  0x4d   :  { %1172 = vmatpush3.msra.mxu1 %v557_v27  ;;  %1139 = vmatpush3.msra.mxu0 %v524_v30  ;;  %v550_v55 = vld [vmem:[#allocation7 + $0x100] sm:$0xff]  ;;  %v231_v63 = vrot.slane %v1626_v60, %v230_v59 }
  0x4e   :  { %1173 = vmatprep.subr.mxu1 %v572_v29  ;;  %1140 = vmatprep.subr.mxu0 %v539_v32 }
  0x4f   :  { %1174 = vmatpush3.msra.mxu1 %v556_v31  ;;  %1141 = vmatpush3.msra.mxu0 %v523_v34 }
  0x50   :  { %1175 = vmatprep.subr.mxu1 %v571_v33  ;;  %1142 = vmatprep.subr.mxu0 %v538_v36 }
  0x51   :  { %1176 = vmatpush3.msra.mxu1 %v555_v35  ;;  %1143 = vmatpush3.msra.mxu0 %v522_v38 }
  0x52   :  { %1177 = vmatprep.subr.mxu1 %v570_v37  ;;  %1144 = vmatprep.subr.mxu0 %v537_v40 }
  0x53   :  { %1178 = vmatpush3.msra.mxu1 %v554_v39  ;;  %1145 = vmatpush3.msra.mxu0 %v521_v42 }
  0x54   :  { %1179 = vmatprep.subr.mxu1 %v569_v41  ;;  %1146 = vmatprep.subr.mxu0 %v536_v44 }
  0x55   :  { %1180 = vmatpush3.msra.mxu1 %v553_v43  ;;  %1147 = vmatpush3.msra.mxu0 %v520_v46 }
  0x56   :  { %1181 = vmatprep.subr.mxu1 %v568_v45  ;;  %1148 = vmatprep.subr.mxu0 %v535_v48 }
  0x57   :  { %1182 = vmatpush3.msra.mxu1 %v552_v47  ;;  %1149 = vmatpush3.msra.mxu0 %v519_v50 }
  0x58   :  { %1183 = vmatprep.subr.mxu1 %v567_v49  ;;  %1150 = vmatprep.subr.mxu0 %v534_v52  ;;  %v426_v52 = vsub.s32 1, %v1620_v57 }
  0x59   :  { %1184 = vmatpush3.msra.mxu1 %v551_v51  ;;  %1151 = vmatpush3.msra.mxu0 %v518_v54 }
  0x5a   :  { %1185 = vmatprep.subr.mxu1 %v566_v53 }
  0x5b   :  { %1186 = vmatpush3.msra.mxu1 %v550_v55 }
  0xf5   :  { %v1070_v58 = vpop.f32.mrf.mxu0 }
  0xf6   :  { %v1111_v61 = vpop.f32.mrf.mxu1 }
  0xf7   :  { %v1071_v62 = vpop.f32.mrf.mxu0 }
  0xf8   :  { %v1072_v0 = vadd.f32 %v1071_v62, %v1070_v58  ;;  %v1112_v1 = vpop.f32.mrf.mxu1 }
  0xf9   :  { %v1113_v7 = vadd.f32 %v1112_v1, %v1111_v61 }
  0xfa   :  { %v299_v3 = vadd.f32 %v1072_v0, %v231_v63 }
  0xfc   :  { %v379_v12 = vadd.f32 %v1113_v7, %v299_v3 }
  0xfe   :  { %v1073_v2 = vpop.f32.mrf.mxu0  ;;  %v392_v21 = vmax.f32 %v379_v12, 0.0 }
 0x100   :  { %v1114_v4 = vpop.f32.mrf.mxu1  ;;  %v1074_v5 = vpop.f32.mrf.mxu0  ;;  %v406_v25 = vmul.f32 %v392_v21, %v392_v21 }
 0x101   :  { %v1075_v6 = vadd.f32 %v1074_v5, %v1073_v2 }
 0x102   :  { %v1115_v8 = vpop.f32.mrf.mxu1  ;;  %v1076_v9 = vpop.f32.mrf.mxu0 }
 0x103   :  { %v304_v10 = vadd.f32 %v1075_v6, %v231_v63  ;;  %v1116_v11 = vadd.f32 %v1115_v8, %v1114_v4 }
 0x104   :  { %v1117_v13 = vpop.f32.mrf.mxu1  ;;  %v1077_v14 = vpop.f32.mrf.mxu0 }
 0x105   :  { %v384_v15 = vadd.f32 %v1116_v11, %v304_v10  ;;  %v1078_v16 = vadd.f32 %v1077_v14, %v1076_v9 }
 0x106   :  { %v1118_v17 = vpop.f32.mrf.mxu1 }
 0x107   :  { %v393_v18 = vmax.f32 %v384_v15, 0.0  ;;  %v309_v19 = vadd.f32 %v1078_v16, %v231_v63  ;;  %v1119_v20 = vadd.f32 %v1118_v17, %v1117_v13 }
 0x109   :  { %v389_v22 = vadd.f32 %v1119_v20, %v309_v19  ;;  %v407_v23 = vmul.f32 %v393_v18, %v393_v18  ;;  %v395_v26 = vadd.f32 %v393_v18, %v392_v21 }
 0x10b   :  { %v394_v24 = vmax.f32 %v389_v22, 0.0  ;;  %v409_v29 = vadd.f32 %v407_v23, %v406_v25 }
 0x10d   :  { %v397_v27 = vsel %vm396_vm0, %v394_v24, 0.0  ;;  %v408_v28 = vmul.f32 %v394_v24, %v394_v24 }
 0x10e   :  { %v398_v30 = vadd.f32 %v397_v27, %v395_v26 }
 0x10f   :  { %v410_v31 = vsel %vm396_vm0, %v408_v28, 0.0 }
 0x110   :  { %v399_v32 = vrot.slane %v398_v30, 4  ;;  %v411_v33 = vadd.f32 %v410_v31, %v409_v29 }
 0x112   :  { %v400_v34 = vadd.f32 %v399_v32, %v398_v30  ;;  %v412_v35 = vrot.slane %v411_v33, 4 }
 0x114   :  { %v401_v36 = vrot.slane %v400_v34, 2  ;;  %v413_v37 = vadd.f32 %v412_v35, %v411_v33  ;;  %v811_v35 = vld [vmem:[%s1843_s3 + $0xf8] sm:$0xff] }
 0x115   :  { %1190 = vmatprep.subr.mxu0 %v811_v35  ;;  %v828_v35 = vld [vmem:[%s1843_s3 + $0x180] sm:$0xff] }
 0x116   :  { %v402_v38 = vadd.f32 %v401_v36, %v400_v34  ;;  %v414_v39 = vrot.slane %v413_v37, 2  ;;  %v795_v36 = vld [vmem:[%s1843_s3 + $0x78] sm:$0xff] }
 0x118   :  { %v403_v40 = vrot.slane %v402_v38, 1  ;;  %v415_v41 = vadd.f32 %v414_v39, %v413_v37  ;;  %v810_v37 = vld [vmem:[%s1843_s3 + $0xf0] sm:$0xff] }
 0x119   :  { %v794_v39 = vld [vmem:[%s1843_s3 + $0x70] sm:$0xff] }
 0x11a   :  { %v404_v42 = vadd.f32 %v403_v40, %v402_v38  ;;  %v416_v43 = vrot.slane %v415_v41, 1  ;;  %v843_v38 = vld [vmem:[%s1843_s3 + $0x1f8] sm:$0xff] }
 0x11b   :  { %1225 = vmatprep.subr.mxu1 %v843_v38  ;;  %v827_v40 = vld [vmem:[%s1843_s3 + $0x178] sm:$0xff] }
 0x11c   :  { %v405_v44 = vmul.f32 0.055555556, %v404_v42  ;;  %v417_v45 = vadd.f32 %v416_v43, %v415_v41  ;;  %v809_v41 = vld [vmem:[%s1843_s3 + $0xe8] sm:$0xff]  ;;  %v842_v42 = vld [vmem:[%s1843_s3 + $0x1f0] sm:$0xff] }
 0x11d   :  { %v793_v43 = vld [vmem:[%s1843_s3 + $0x68] sm:$0xff] }
 0x11e   :  { %v418_v46 = vmul.f32 0.055555556, %v417_v45  ;;  %v419_v47 = vmul.f32 %v405_v44, %v405_v44  ;;  %v808_v45 = vld [vmem:[%s1843_s3 + $0xe0] sm:$0xff] }
 0x120   :  { %v420_v48 = vsub.f32 %v418_v46, %v419_v47  ;;  %v841_v46 = vld [vmem:[%s1843_s3 + $0x1e8] sm:$0xff]  ;;  %v792_v47 = vld [vmem:[%s1843_s3 + $0x60] sm:$0xff] }
 0x122   :  { %v421_v49 = vadd.f32 1e-05, %v420_v48  ;;  %v825_v48 = vld [vmem:[%s1843_s3 + $0x168] sm:$0xff] }
 0x124   :  { %1266 = vrsqrt.f32 %v421_v49  ;;  %v807_v49 = vld [vmem:[%s1843_s3 + $0xd8] sm:$0xff] }
 0x131   :  { %v1267_v50 = vpop.eup %1266 }
 0x132   :  { %v423_v51 = vmul.f32 %v1267_v50, %v1626_v60  ;;  %v840_v50 = vld [vmem:[%s1843_s3 + $0x1e0] sm:$0xff] }
 0x134   :  { %v431_v53 = vmul.f32 %v423_v51, %v405_v44  ;;  %v427_v54 = vrot.slane %v423_v51, %v426_v52  ;;  %v826_v44 = vld [vmem:[%s1843_s3 + $0x170] sm:$0xff]  ;;  %v791_v51 = vld [vmem:[%s1843_s3 + $0x58] sm:$0xff]  ;;  %v824_v52 = vld [vmem:[%s1843_s3 + $0x160] sm:$0xff] }
 0x136   :  { %v433_v55 = vrot.slane %v431_v53, 7  ;;  %v428_v59 = vmul.f32 %v427_v54, %v392_v21  ;;  %v429_v61 = vmul.f32 %v427_v54, %v393_v18  ;;  %v430_v62 = vmul.f32 %v427_v54, %v394_v24  ;;  %v806_v53 = vld [vmem:[%s1843_s3 + $0xd0] sm:$0xff]  ;;  %v839_v54 = vld [vmem:[%s1843_s3 + $0x1d8] sm:$0xff] }
 0x138   :  { %v435_v58 = vsub.f32 %v1626_v60, %v433_v55  ;;  %v790_v55 = vld [vmem:[%s1843_s3 + $0x50] sm:$0xff] }
 0x13a   :  { %v439_v63 = vrot.slane %v435_v58, %v438_v56  ;;  %v823_v56 = vld [vmem:[%s1843_s3 + $0x158] sm:$0xff]  ;;  %v805_v58 = vld [vmem:[%s1843_s3 + $0xc8] sm:$0xff] }
 0x13c   :  { %v440_v0 = vadd.f32 %v439_v63, %v428_v59  ;;  %v441_v1 = vadd.f32 %v439_v63, %v429_v61  ;;  %v442_v2 = vadd.f32 %v439_v63, %v430_v62  ;;  %v838_v59 = vld [vmem:[%s1843_s3 + $0x1d0] sm:$0xff]  ;;  %v789_v61 = vld [vmem:[%s1843_s3 + $0x48] sm:$0xff]  ;;  %v804_v63 = vld [vmem:[%s1843_s3 + $0xc0] sm:$0xff] }
 0x13d   :  { %v822_v62 = vld [vmem:[%s1843_s3 + $0x150] sm:$0xff] }
 0x13e   :  { %443 = vst [vmem:[#allocation3] sm:$0xff] %v440_v0  ;;  %444 = vst [vmem:[#allocation3 + $0x8] sm:$0xff] %v441_v1  ;;  %v837_v0 = vld [vmem:[%s1843_s3 + $0x1c8] sm:$0xff]  ;;  %v788_v1 = vld [vmem:[%s1843_s3 + $0x40] sm:$0xff] }
 0x13f   :  { %445 = vst [vmem:[#allocation3 + $0x10] sm:$0x3] %v442_v2  ;;  %v821_v2 = vld [vmem:[%s1843_s3 + $0x148] sm:$0xff] }
 0x145   :  { %v463_v3 = vld [vmem:[#allocation3 + $0x1] sm:$0x3]  ;;  %v465_v4 = vld [vmem:[#allocation3 + $0x4] sm:$0x3]  ;;  %v470_v5 = vld [vmem:[#allocation3 + $0xa] sm:$0x3] }
 0x146   :  { %464 = vst [vmem:[#allocation4] sm:$0x3] %v463_v3  ;;  %v467_v6 = vrot.slane %v465_v4, 6  ;;  %v472_v7 = vrot.slane %v470_v5, 4  ;;  %v475_v8 = vld [vmem:[#allocation3 + $0xd] sm:$0x3] }
 0x147   :  { %v497_v9 = vld [vmem:[#allocation3 + $0x4] sm:$0x3]  ;;  %v477_v10 = vrot.slane %v475_v8, 2  ;;  %v499_v11 = vld [vmem:[#allocation3 + $0x7] sm:$0x3]  ;;  %v803_v3 = vld [vmem:[%s1843_s3 + $0xb8] sm:$0xff] }
 0x148   :  { %498 = vst [vmem:[#allocation4 + $0x18] sm:$0x3] %v497_v9  ;;  %v504_v12 = vld [vmem:[#allocation3 + $0xd] sm:$0x3]  ;;  %469 = vst [vmem:[#allocation4] sm:$0xc] %v467_v6 }
 0x149   :  { %474 = vst [vmem:[#allocation4] sm:$0x30] %v472_v7  ;;  %v501_v13 = vrot.slane %v499_v11, 6  ;;  %v506_v14 = vrot.slane %v504_v12, 4  ;;  %v509_v15 = vld [vmem:[#allocation3 + $0x10] sm:$0x3] }
 0x14a   :  { %v446_v16 = vld [vmem:[#allocation3] sm:$0x3]  ;;  %479 = vst [vmem:[#allocation4] sm:$0xc0] %v477_v10  ;;  %v511_v17 = vrot.slane %v509_v15, 2  ;;  %v787_v5 = vld [vmem:[%s1843_s3 + $0x38] sm:$0xff] }
 0x14b   :  { %447 = vst [vmem:[#allocation4 + $0x8] sm:$0x3] %v446_v16  ;;  %v448_v18 = vld [vmem:[#allocation3 + $0x3] sm:$0x3]  ;;  %v453_v19 = vld [vmem:[#allocation3 + $0x9] sm:$0x3] }
 0x14c   :  { %503 = vst [vmem:[#allocation4 + $0x18] sm:$0xc] %v501_v13  ;;  %508 = vst [vmem:[#allocation4 + $0x18] sm:$0x30] %v506_v14  ;;  %v450_v20 = vrot.slane %v448_v18, 6  ;;  %v455_v21 = vrot.slane %v453_v19, 4 }
 0x14d   :  { %v458_v22 = vld [vmem:[#allocation3 + $0xc] sm:$0x3]  ;;  %v480_v23 = vld [vmem:[#allocation3 + $0x3] sm:$0x3]  ;;  %513 = vst [vmem:[#allocation4 + $0x18] sm:$0xc0] %v511_v17 }
 0x14e   :  { %v460_v24 = vrot.slane %v458_v22, 2  ;;  %481 = vst [vmem:[#allocation4 + $0x10] sm:$0x3] %v480_v23  ;;  %v482_v25 = vld [vmem:[#allocation3 + $0x6] sm:$0x3]  ;;  %v802_v7 = vld [vmem:[%s1843_s3 + $0xb0] sm:$0xff] }
 0x14f   :  { %v487_v26 = vld [vmem:[#allocation3 + $0xc] sm:$0x3]  ;;  %452 = vst [vmem:[#allocation4 + $0x8] sm:$0xc] %v450_v20  ;;  %457 = vst [vmem:[#allocation4 + $0x8] sm:$0x30] %v455_v21 }
 0x150   :  { %v484_v27 = vrot.slane %v482_v25, 6  ;;  %v489_v28 = vrot.slane %v487_v26, 4  ;;  %v492_v29 = vld [vmem:[#allocation3 + $0xf] sm:$0x3]  ;;  %462 = vst [vmem:[#allocation4 + $0x8] sm:$0xc0] %v460_v24 }
 0x151   :  { %v494_v30 = vrot.slane %v492_v29, 2  ;;  %v515_v31 = vld [vmem:[#allocation4] sm:$0xff]  ;;  %v836_v4 = vld [vmem:[%s1843_s3 + $0x1c0] sm:$0xff]  ;;  %v786_v9 = vld [vmem:[%s1843_s3 + $0x30] sm:$0xff] }
 0x152   :  { %486 = vst [vmem:[#allocation4 + $0x10] sm:$0xc] %v484_v27  ;;  %491 = vst [vmem:[#allocation4 + $0x10] sm:$0x30] %v489_v28  ;;  %650 = vmatprep.mubr.f32.mxu0 %v515_v31  ;;  %v820_v6 = vld [vmem:[%s1843_s3 + $0x140] sm:$0xff]  ;;  %v835_v8 = vld [vmem:[%s1843_s3 + $0x1b8] sm:$0xff] }
 0x153   :  { %496 = vst [vmem:[#allocation4 + $0x10] sm:$0xc0] %v494_v30  ;;  %v819_v10 = vld [vmem:[%s1843_s3 + $0x138] sm:$0xff]  ;;  %v801_v11 = vld [vmem:[%s1843_s3 + $0xa8] sm:$0xff]  ;;  %v834_v12 = vld [vmem:[%s1843_s3 + $0x1b0] sm:$0xff] }
 0x154   :  { %v517_v32 = vld [vmem:[#allocation4 + $0x18] sm:$0xff]  ;;  %v785_v13 = vld [vmem:[%s1843_s3 + $0x28] sm:$0xff]  ;;  %v800_v15 = vld [vmem:[%s1843_s3 + $0xa0] sm:$0xff] }
 0x155   :  { %720 = vmatprep.mubr.f32.mxu1 %v517_v32  ;;  %v818_v14 = vld [vmem:[%s1843_s3 + $0x130] sm:$0xff]  ;;  %v833_v16 = vld [vmem:[%s1843_s3 + $0x1a8] sm:$0xff]  ;;  %v784_v17 = vld [vmem:[%s1843_s3 + $0x20] sm:$0xff] }
 0x156   :  { %v817_v18 = vld [vmem:[%s1843_s3 + $0x128] sm:$0xff]  ;;  %v799_v19 = vld [vmem:[%s1843_s3 + $0x98] sm:$0xff]  ;;  %v832_v20 = vld [vmem:[%s1843_s3 + $0x1a0] sm:$0xff] }
 0x157   :  { %v514_v33 = vld [vmem:[#allocation4 + $0x8] sm:$0xff]  ;;  %v783_v21 = vld [vmem:[%s1843_s3 + $0x18] sm:$0xff]  ;;  %v798_v23 = vld [vmem:[%s1843_s3 + $0x90] sm:$0xff] }
 0x158   :  { %651 = vmatmul.mubr.f32.vlgmr.msra.gmra.mxu0 %v514_v33  ;;  %v816_v22 = vld [vmem:[%s1843_s3 + $0x120] sm:$0xff]  ;;  %v831_v24 = vld [vmem:[%s1843_s3 + $0x198] sm:$0xff]  ;;  %v782_v25 = vld [vmem:[%s1843_s3 + $0x10] sm:$0xff] }
 0x159   :  { %1191 = vmatpush3.msra.mxu0 %v795_v36  ;;  %v815_v26 = vld [vmem:[%s1843_s3 + $0x118] sm:$0xff]  ;;  %v797_v27 = vld [vmem:[%s1843_s3 + $0x88] sm:$0xff]  ;;  %v830_v28 = vld [vmem:[%s1843_s3 + $0x190] sm:$0xff] }
 0x15a   :  { %v516_v34 = vld [vmem:[#allocation4 + $0x10] sm:$0xff]  ;;  %1192 = vmatprep.subr.mxu0 %v810_v37  ;;  %v814_v30 = vld [vmem:[%s1843_s3 + $0x110] sm:$0xff]  ;;  %v796_v31 = vld [vmem:[%s1843_s3 + $0x80] sm:$0xff]  ;;  %v584_v37 = vsub.s32 3, %v1620_v57 }
 0x15b   :  { %721 = vmatmul.mubr.f32.vlgmr.msra.gmra.mxu1 %v516_v34  ;;  %1193 = vmatpush3.msra.mxu0 %v794_v39  ;;  %v781_v29 = vld [vmem:[%s1843_s3 + $0x8] sm:$0xff]  ;;  %v780_v33 = vld [vmem:[%s1843_s3] sm:$0xff] }
 0x15c   :  { %1226 = vmatpush3.msra.mxu1 %v827_v40  ;;  %1194 = vmatprep.subr.mxu0 %v809_v41  ;;  %v829_v32 = vld [vmem:[%s1843_s3 + $0x188] sm:$0xff]  ;;  %v812_v36 = vld [vmem:[%s1843_s3 + $0x100] sm:$0xff]  ;;  %v585_v39 = vrot.slane %v1626_v60, %v584_v37 }
 0x15d   :  { %1227 = vmatprep.subr.mxu1 %v842_v42  ;;  %1195 = vmatpush3.msra.mxu0 %v793_v43  ;;  %v813_v34 = vld [vmem:[%s1843_s3 + $0x108] sm:$0xff]  ;;  %s1322_s3 = smov [#allocation10]  }
 0x15e   :  { %1228 = vmatpush3.msra.mxu1 %v826_v44  ;;  %1196 = vmatprep.subr.mxu0 %v808_v45  ;;  %s1029_s30 = sshll.u32 %s1322_s3, 4  ;;  %s1030_s30 = int_to_ptr.vmem [resolvable:$true] %s1029_s30 }
 0x15f   :  { %1229 = vmatprep.subr.mxu1 %v841_v46  ;;  %1197 = vmatpush3.msra.mxu0 %v792_v47  ;;  %s1294_s6 = scalar_lea.vmem %s1030_s30, 32  ;;  %p1299_p6 = scmp.lt.s32.totalorder %s1030_s30, %s1030_s30 }
 0x160   :  { %1230 = vmatpush3.msra.mxu1 %v825_v48  ;;  %1198 = vmatprep.subr.mxu0 %v807_v49  ;;  %p1295_p5 = scmp.ne.s32.totalorder %s1030_s30, %s1294_s6  ;;  %p1300_p7 = scmp.lt.s32.totalorder %s1294_s6, %s1294_s6 }
 0x161   :  { %1231 = vmatprep.subr.mxu1 %v840_v50  ;;  %1199 = vmatpush3.msra.mxu0 %v791_v51 }
 0x162   :  { %1232 = vmatpush3.msra.mxu1 %v824_v52  ;;  %1200 = vmatprep.subr.mxu0 %v806_v53  ;;  %p1301_p8 = por %p1300_p7, %p1299_p6 }
 0x163   :  { %1233 = vmatprep.subr.mxu1 %v839_v54  ;;  %1201 = vmatpush3.msra.mxu0 %v790_v55 }
 0x164   :  { %1234 = vmatpush3.msra.mxu1 %v823_v56  ;;  %1202 = vmatprep.subr.mxu0 %v805_v58  ;;  %p1302_p9 = pnand %p1301_p8, %p1295_p5 }
 0x165   :  { %1235 = vmatprep.subr.mxu1 %v838_v59  ;;  %1203 = vmatpush3.msra.mxu0 %v789_v61 }
 0x166   :  { %1236 = vmatpush3.msra.mxu1 %v822_v62  ;;  %1204 = vmatprep.subr.mxu0 %v804_v63 }
 0x167   :  { %1237 = vmatprep.subr.mxu1 %v837_v0  ;;  %1205 = vmatpush3.msra.mxu0 %v788_v1 }
 0x168   :  { %1238 = vmatpush3.msra.mxu1 %v821_v2  ;;  %1206 = vmatprep.subr.mxu0 %v803_v3 }
 0x169   :  { %1239 = vmatprep.subr.mxu1 %v836_v4  ;;  %1207 = vmatpush3.msra.mxu0 %v787_v5 }
 0x16a   :  { %1240 = vmatpush3.msra.mxu1 %v820_v6  ;;  %1208 = vmatprep.subr.mxu0 %v802_v7  ;;  %v749_v6 = vsub.s32 4, %v1620_v57 }
 0x16b   :  { %1241 = vmatprep.subr.mxu1 %v835_v8  ;;  %1209 = vmatpush3.msra.mxu0 %v786_v9 }
 0x16c   :  { %1242 = vmatpush3.msra.mxu1 %v819_v10  ;;  %1210 = vmatprep.subr.mxu0 %v801_v11  ;;  %v759_v10 = vsub.s32 5, %v1620_v57 }
 0x16d   :  { %1243 = vmatprep.subr.mxu1 %v834_v12  ;;  %1211 = vmatpush3.msra.mxu0 %v785_v13 }
 0x16e   :  { %1244 = vmatpush3.msra.mxu1 %v818_v14  ;;  %1212 = vmatprep.subr.mxu0 %v800_v15  ;;  %v1321_v15 = vmov 1983009808  }
 0x16f   :  { %1245 = vmatprep.subr.mxu1 %v833_v16  ;;  %1213 = vmatpush3.msra.mxu0 %v784_v17  ;;  %v851_v16 = vunpack.c.l.s4 %v1321_v15 }
 0x170   :  { %1246 = vmatpush3.msra.mxu1 %v817_v18  ;;  %1214 = vmatprep.subr.mxu0 %v799_v19 }
 0x171   :  { %1247 = vmatprep.subr.mxu1 %v832_v20  ;;  %1215 = vmatpush3.msra.mxu0 %v783_v21 }
 0x172   :  { %1248 = vmatpush3.msra.mxu1 %v816_v22  ;;  %1216 = vmatprep.subr.mxu0 %v798_v23 }
 0x173   :  { %1249 = vmatprep.subr.mxu1 %v831_v24  ;;  %1217 = vmatpush3.msra.mxu0 %v782_v25  ;;  %v852_v25 = vunpack.c.0.s8 %v851_v16 }
 0x174   :  { %1250 = vmatpush3.msra.mxu1 %v815_v26  ;;  %1218 = vmatprep.subr.mxu0 %v797_v27 }
 0x175   :  { %1251 = vmatprep.subr.mxu1 %v830_v28  ;;  %1219 = vmatpush3.msra.mxu0 %v781_v29  ;;  %v855_v26 = vsub.s32 %v852_v25, %v1620_v57 }
 0x176   :  { %1252 = vmatpush3.msra.mxu1 %v814_v30  ;;  %1220 = vmatprep.subr.mxu0 %v796_v31 }
 0x177   :  { %1253 = vmatprep.subr.mxu1 %v829_v32  ;;  %1221 = vmatpush3.msra.mxu0 %v780_v33  ;;  %v846_v33 = vsub.s32 6, %v1620_v57 }
 0x178   :  { %1254 = vmatpush3.msra.mxu1 %v813_v34 }
 0x179   :  { %1255 = vmatprep.subr.mxu1 %v828_v35  ;;  %v847_v35 = vrot.slane %v1626_v60, %v846_v33 }
 0x17a   :  { %1256 = vmatpush3.msra.mxu1 %v812_v36 }
 0x218   :  { %v1152_v38 = vpop.f32.mrf.mxu0 }
 0x21a   :  { %v1153_v41 = vpop.f32.mrf.mxu0 }
 0x21b   :  { %v1187_v40 = vpop.f32.mrf.mxu1  ;;  %v1154_v42 = vadd.f32 %v1153_v41, %v1152_v38 }
 0x21d   :  { %v1188_v43 = vpop.f32.mrf.mxu1  ;;  %v653_v44 = vadd.f32 %v1154_v42, %v585_v39 }
 0x21e   :  { %v1189_v45 = vadd.f32 %v1188_v43, %v1187_v40 }
 0x220   :  { %v723_v46 = vadd.f32 %v1189_v45, %v653_v44 }
 0x222   :  { %v726_v47 = vmax.f32 %v723_v46, 0.0 }
 0x224   :  { %v727_v48 = vrot.slane %v726_v47, 4  ;;  %v734_v49 = vmul.f32 %v726_v47, %v726_v47 }
 0x226   :  { %v728_v50 = vadd.f32 %v727_v48, %v726_v47  ;;  %v735_v51 = vrot.slane %v734_v49, 4 }
 0x228   :  { %v729_v52 = vrot.slane %v728_v50, 2  ;;  %v736_v53 = vadd.f32 %v735_v51, %v734_v49 }
 0x22a   :  { %v730_v54 = vadd.f32 %v729_v52, %v728_v50  ;;  %v737_v55 = vrot.slane %v736_v53, 2 }
 0x22c   :  { %v731_v56 = vrot.slane %v730_v54, 1  ;;  %v738_v58 = vadd.f32 %v737_v55, %v736_v53 }
 0x22e   :  { %v732_v59 = vadd.f32 %v731_v56, %v730_v54  ;;  %v739_v61 = vrot.slane %v738_v58, 1 }
 0x230   :  { %v733_v62 = vmul.f32 0.125, %v732_v59  ;;  %v740_v63 = vadd.f32 %v739_v61, %v738_v58 }
 0x232   :  { %v741_v0 = vmul.f32 0.125, %v740_v63  ;;  %v742_v1 = vmul.f32 %v733_v62, %v733_v62 }
 0x234   :  { %v743_v2 = vsub.f32 %v741_v0, %v742_v1 }
 0x236   :  { %v744_v3 = vadd.f32 1e-05, %v743_v2 }
 0x238   :  { %1268 = vrsqrt.f32 %v744_v3 }
 0x245   :  { %v1269_v4 = vpop.eup %1268 }
 0x246   :  { %v746_v5 = vmul.f32 %v1269_v4, %v1626_v60 }
 0x248   :  { %v752_v7 = vmul.f32 %v746_v5, %v733_v62  ;;  %v750_v8 = vrot.slane %v746_v5, %v749_v6 }
 0x24a   :  { %v754_v9 = vrot.slane %v752_v7, 7  ;;  %v751_v12 = vmul.f32 %v750_v8, %v726_v47 }
 0x24c   :  { %v756_v11 = vsub.f32 %v1626_v60, %v754_v9 }
 0x24e   :  { %v760_v13 = vrot.slane %v756_v11, %v759_v10 }
 0x250   :  { %v761_v14 = vadd.f32 %v760_v13, %v751_v12 }
 0x252   :  { %762 = vst [vmem:[#allocation5] sm:$0xff] %v761_v14 }
 0x259   :  { %v763_v17 = vld [vmem:[#allocation5] sm:$0x1]  ;;  %v765_v18 = vld [vmem:[#allocation5 + $0x1] sm:$0x1]  ;;  %v767_v19 = vld [vmem:[#allocation5 + $0x2] sm:$0x1] }
 0x25a   :  { %764 = vst [vmem:[#allocation6] sm:$0x1] %v763_v17  ;;  %766 = vst [vmem:[#allocation6 + $0x2] sm:$0x1] %v765_v18  ;;  %v769_v20 = vld [vmem:[#allocation5 + $0x3] sm:$0x1] }
 0x25b   :  { %768 = vst [vmem:[#allocation6 + $0x4] sm:$0x1] %v767_v19  ;;  %v771_v21 = vld [vmem:[#allocation5 + $0x4] sm:$0x1]  ;;  %v773_v22 = vld [vmem:[#allocation5 + $0x5] sm:$0x1] }
 0x25c   :  { %770 = vst [vmem:[#allocation6 + $0x6] sm:$0x1] %v769_v20  ;;  %772 = vst [vmem:[#allocation6 + $0x1] sm:$0x1] %v771_v21  ;;  %v775_v23 = vld [vmem:[#allocation5 + $0x6] sm:$0x1] }
 0x25d   :  { %774 = vst [vmem:[#allocation6 + $0x3] sm:$0x1] %v773_v22  ;;  %v777_v24 = vld [vmem:[#allocation5 + $0x7] sm:$0x1]  ;;  %776 = vst [vmem:[#allocation6 + $0x5] sm:$0x1] %v775_v23 }
 0x25e   :  { %778 = vst [vmem:[#allocation6 + $0x7] sm:$0x1] %v777_v24 }
 0x265   :  { %v779_v27 = vld [vmem:[#allocation6] sm:$0xff] }
 0x266   :  { %v856_v28 = vrot.slane %v779_v27, %v855_v26  ;;  %v849_v29 = vcombine.high %v779_v27, %v779_v27 }
 0x268   :  { %v864_v30 = vcombine.high %v856_v28, %v856_v28  ;;  %v863_v31 = vrot.slane %v849_v29, %v855_v26 }
 0x26a   :  { %934 = vmatprep.mubr.f32.mxu0 %v864_v30  ;;  %v865_v32 = vcombine.high %v863_v31, %v863_v31 }
 0x26b   :  { %935 = vmatmul.mubr.f32.vlgmr.msra.gmra.mxu0 %v856_v28 }
 0x26c   :  { %1004 = vmatprep.mubr.f32.mxu1 %v865_v32 }
 0x26d   :  { %1005 = vmatmul.mubr.f32.vlgmr.msra.gmra.mxu1 %v863_v31 }
 0x32b   :  { %v1222_v34 = vpop.f32.mrf.mxu0 }
 0x32d   :  { %v1223_v36 = vpop.f32.mrf.mxu0  ;;  %v1257_v37 = vpop.f32.mrf.mxu1 }
 0x32e   :  { %v1224_v38 = vadd.f32 %v1223_v36, %v1222_v34 }
 0x32f   :  { %v1258_v39 = vpop.f32.mrf.mxu1 }
 0x330   :  { %v937_v40 = vadd.f32 %v1224_v38, %v847_v35  ;;  %v1259_v41 = vadd.f32 %v1258_v39, %v1257_v37 }
 0x332   :  { %v1007_v42 = vadd.f32 %v1259_v41, %v937_v40 }
 0x334   :  { %v1011_v43 = vsel %vm1010_vm1, %v1007_v42, -inf }
 0x335   :  { %1012 = vmax.xlane.f32.xlu0 %v1011_v43 }
 0x3be   :  { %v1013_v44 = vpop.xlane.xlu0 %1012 }
 0x3bf   :  { %v1014_v45 = vsub.f32 %v1007_v42, %v1013_v44 }
 0x3c1   :  { %v1015_v46 = vmul.f32 1.442695, %v1014_v45 }
 0x3c3   :  { %1270 = vpow2.f32 %v1015_v46 }
 0x3d0   :  { %v1271_v47 = vpop.eup %1270 }
 0x3d1   :  { %v1017_v57 = vsel %vm1010_vm1, %v1271_v47, 0.0 }
 0x3d2   :  { %1018 = vadd.xlane.f32.xlu0 %v1017_v57 }
 0x45b   :  { %v1019_v60 = vpop.xlane.xlu0 %1018 }
 0x45c   :  { %1272 = vrcp.f32 %v1019_v60 }
 0x469   :  { %v1273_v48 = vpop.eup %1272 }
 0x46a   :  { %v1021_v49 = vmul.f32 %v1273_v48, %v1271_v47 }
 0x46c   :  { %1022 = vst.msk [vmem:[#allocation10] sm:$0x3] %vm1010_vm1, %v1021_v49 }
 0x46d   :  { %1305 = shalt.err (!%p1302_p9)
}
 0x46e   :  { %1032 = dma.vmem_to_hbm [thread:$0]  %s1030_s30, 32, %s1845_s5, [#allocation9]  }
 0x46f   :  { %1316 = dma.done.wait [#allocation9], 32  }
 0x470   :  { %1317 = vsyncadd [#allocation9], 4294967264 }
 0x471   :  { %1036 = vsyncpa [#allocation8], 1 }
 0x472   :  { %1037 = vsyncpa [#allocation9], 1 }

</bundles_post_ra>
